<compile_context>
chip_gen: v7x
topology: tpu7x:2x2x1
jax: 0.10.0
libtpu: 0.0.40
codegen_flags: <defaults>
</compile_context>

<pallas_src>
import functools
import math

import jax
import jax.numpy as jnp
from jax.experimental import pallas as pl
from jax.experimental.pallas import tpu as pltpu


def mha_kernel(q_ref, k_ref, v_ref,                    # (tq, D), (S, D), (S, D)
               wq_ref, wk_ref, wv_ref, wo_ref,         # (D, D) each (Wq pre-scaled)
               bq_ref, bk_ref, bv_ref, bo_ref,         # (1, D) each (bq pre-scaled)
               o_ref,                                   # (tq, D) output
               ctx_scratch,                             # VMEM (tq, D) f32 staging
               *, num_heads, mxu_dtype):
    tq, d_model = q_ref.shape
    s_kv = k_ref.shape[0]
    dk = d_model // num_heads

    def mm(a, b):
        # MXU matmul with f32 accumulation; bf16 inputs on v6e/v7x, f32 otherwise.
        return jnp.dot(a.astype(mxu_dtype), b.astype(mxu_dtype),
                       preferred_element_type=jnp.float32)

    # --- Dense lane-wide QKV projections (scale already folded into Wq/bq). ---
    q_p = mm(q_ref[...], wq_ref[...]) + bq_ref[...]          # (tq, D)
    k_p = mm(k_ref[...], wk_ref[...]) + bk_ref[...]          # (S, D)
    v_p = mm(v_ref[...], wv_ref[...]) + bv_ref[...]          # (S, D)

    # --- Split heads from the lane axis -> head-major (H, rows, dk). ---
    def split_heads(x):
        return jnp.stack(
            [x[:, i * dk:(i + 1) * dk] for i in range(num_heads)], axis=0)

    q_h = split_heads(q_p)                                   # (H, tq, dk)
    k_h = split_heads(k_p)                                   # (H, S,  dk)
    v_h = split_heads(v_p)                                   # (H, S,  dk)

    # --- Scaled dot-product attention (leading-batch = heads, lane = kv len). ---
    scores = jnp.einsum('hqd,hkd->hqk',
                        q_h.astype(mxu_dtype), k_h.astype(mxu_dtype),
                        preferred_element_type=jnp.float32)  # (H, tq, S)
    # TODO(synk): mask path (masked_fill(mask==0, -1e9)) not wired; mask=None only.
    m = jnp.max(scores, axis=-1, keepdims=True)
    e = jnp.exp(scores - m)                                  # f32 on VPU/EUP
    l = jnp.sum(e, axis=-1, keepdims=True)                   # (H, tq, 1)
    # TODO(synk): nn.Dropout(p=0.1) on the attention weights is identity in eval.

    ctx = jnp.einsum('hqk,hkd->hqd',
                     e.astype(mxu_dtype), v_h.astype(mxu_dtype),
                     preferred_element_type=jnp.float32)     # (H, tq, dk)
    ctx = ctx * pl.reciprocal(l, approx=True)                # normalize post-PV (EUP)

    # --- Merge heads into the lane axis (lane-dense (tq, D)), one output matmul. ---
    for i in range(num_heads):
        ctx_scratch[:, i * dk:(i + 1) * dk] = ctx[i]
    out = mm(ctx_scratch[...], wo_ref[...]) + bo_ref[...]    # (tq, D) lane-dense
    o_ref[...] = out.astype(o_ref.dtype)


def multi_headed_attention(query, key, value,
                           wq, bq, wk, bk, wv, bv, wo, bo, *,
                           h, mxu_dtype=jnp.bfloat16, q_tile=128,
                           single_buffer_weights=True):
    """Pallas MultiHeadedAttention.forward (mask=None, eval mode).

    query/key/value: (B, S, D) float32
    wq/wk/wv/wo:     (D, D) float32   (PyTorch nn.Linear (out, in) layout)
    bq/bk/bv/bo:     (D,)   float32
    """
    B, S, D = query.shape
    assert D % h == 0
    dk = D // h
    tq = min(q_tile, S)
    assert S % tq == 0, "toy wrapper assumes S divisible by the q tile"
    nqt = S // tq
    scale = 1.0 / math.sqrt(dk)

    # TODO(synk): in a real model do this weight re-layout / scale folding once at
    # parameter load time, not per forward call.
    wq_t = (wq.T * scale).astype(mxu_dtype)     # fold 1/sqrt(dk) into Q projection
    wk_t = wk.T.astype(mxu_dtype)
    wv_t = wv.T.astype(mxu_dtype)
    wo_t = wo.T.astype(mxu_dtype)
    bq_r = (bq * scale).reshape(1, D)           # biases stay f32
    bk_r = bk.reshape(1, D)
    bv_r = bv.reshape(1, D)
    bo_r = bo.reshape(1, D)

    kernel = functools.partial(mha_kernel, num_heads=h, mxu_dtype=mxu_dtype)

    def build(single_buf):
        def const_spec(shape):
            kwargs = {}
            if single_buf:
                # Grid-invariant inputs: fetched once, no need for double buffering.
                kwargs["pipeline_mode"] = pl.Buffered(1)
            return pl.BlockSpec(shape, lambda b, i: (0,) * len(shape), **kwargs)

        in_specs = [
            pl.BlockSpec((pl.Squeezed(), tq, D), lambda b, i: (b, i, 0)),  # query tile
            pl.BlockSpec((pl.Squeezed(), S, D), lambda b, i: (b, 0, 0)),   # key (full)
            pl.BlockSpec((pl.Squeezed(), S, D), lambda b, i: (b, 0, 0)),   # value (full)
            const_spec((D, D)), const_spec((D, D)),                        # Wq, Wk
            const_spec((D, D)), const_spec((D, D)),                        # Wv, Wo
            const_spec((1, D)), const_spec((1, D)),                        # bq, bk
            const_spec((1, D)), const_spec((1, D)),                        # bv, bo
        ]
        out_specs = pl.BlockSpec((pl.Squeezed(), tq, D), lambda b, i: (b, i, 0))

        return pl.pallas_call(
            kernel,
            out_shape=jax.ShapeDtypeStruct((B, S, D), query.dtype),
            grid=(B, nqt),
            in_specs=in_specs,
            out_specs=out_specs,
            scratch_shapes=[pltpu.VMEM((tq, D), jnp.float32)],
            compiler_params=pltpu.CompilerParams(
                dimension_semantics=("parallel", "parallel"),
                vmem_limit_bytes=32 * 1024 * 1024),
        )

    args = (query, key, value, wq_t, wk_t, wv_t, wo_t, bq_r, bk_r, bv_r, bo_r)
    if single_buffer_weights:
        try:
            return build(True)(*args)
        except Exception:
            # Fall back to default double buffering if this JAX build rejects
            # pipeline_mode=pl.Buffered(1) on the auto-pipelined path.
            pass
    return build(False)(*args)


def _reference_mha(q, k, v, wq, bq, wk, bk, wv, bv, wo, bo, h):
    """Pure-JAX replica of the PyTorch module (mask=None, dropout=identity)."""
    B, S, D = q.shape
    dk = D // h

    def proj(x, w, b):
        return x @ w.T + b

    def split_heads(x):
        return x.reshape(B, S, h, dk).transpose(0, 2, 1, 3)   # (B, h, S, dk)

    Q = split_heads(proj(q, wq, bq))
    K = split_heads(proj(k, wk, bk))
    V = split_heads(proj(v, wv, bv))
    scores = jnp.einsum('bhqd,bhkd->bhqk', Q, K) / math.sqrt(dk)
    p = jax.nn.softmax(scores, axis=-1)
    ctx = jnp.einsum('bhqk,bhkd->bhqd', p, V)
    ctx = ctx.transpose(0, 2, 1, 3).reshape(B, S, D)
    return ctx @ wo.T + bo


if __name__ == "__main__":
    h = 4
    d_model = 32
    batch = 2
    seq = 8

    key = jax.random.PRNGKey(0)
    ks = jax.random.split(key, 11)
    bound = 1.0 / math.sqrt(d_model)

    def make_linear(kw, kb):
        w = jax.random.uniform(kw, (d_model, d_model), jnp.float32, -bound, bound)
        b = jax.random.uniform(kb, (d_model,), jnp.float32, -bound, bound)
        return w, b

    wq, bq = make_linear(ks[0], ks[1])
    wk, bk = make_linear(ks[2], ks[3])
    wv, bv = make_linear(ks[4], ks[5])
    wo, bo = make_linear(ks[6], ks[7])

    q = jax.random.normal(ks[8], (batch, seq, d_model), jnp.float32)
    k = jax.random.normal(ks[9], (batch, seq, d_model), jnp.float32)
    v = jax.random.normal(ks[10], (batch, seq, d_model), jnp.float32)

    ref = _reference_mha(q, k, v, wq, bq, wk, bk, wv, bv, wo, bo, h)

    # Strict check: f32 MXU path (approx reciprocal is the only approximation).
    out_f32 = multi_headed_attention(q, k, v, wq, bq, wk, bk, wv, bv, wo, bo,
                                     h=h, mxu_dtype=jnp.float32)
    jax.block_until_ready(out_f32)
    err32 = float(jnp.max(jnp.abs(out_f32 - ref)))
    assert jnp.allclose(out_f32, ref, atol=2e-3, rtol=2e-3), \
        f"f32 path max abs err = {err32}"

    # bf16-MXU path (v6e/v7x production setting), looser tolerance.
    out_bf16 = multi_headed_attention(q, k, v, wq, bq, wk, bk, wv, bv, wo, bo,
                                      h=h, mxu_dtype=jnp.bfloat16)
    jax.block_until_ready(out_bf16)
    err16 = float(jnp.max(jnp.abs(out_bf16 - ref)))
    assert jnp.allclose(out_bf16, ref, atol=3e-2, rtol=3e-2), \
        f"bf16 path max abs err = {err16}"

    print("KERNEL_OK")
</pallas_src>

<mosaic_0001>
module attributes {stable_mosaic.version = 11 : i64} {
  func.func @mha_kernel(%arg0: i32, %arg1: i32, %arg2: memref<1x8x32xf32, #tpu.memory_space<vmem>>, %arg3: memref<1x8x32xf32, #tpu.memory_space<vmem>>, %arg4: memref<1x8x32xf32, #tpu.memory_space<vmem>>, %arg5: memref<32x32xf32, #tpu.memory_space<vmem>>, %arg6: memref<32x32xf32, #tpu.memory_space<vmem>>, %arg7: memref<32x32xf32, #tpu.memory_space<vmem>>, %arg8: memref<32x32xf32, #tpu.memory_space<vmem>>, %arg9: memref<1x32xf32, #tpu.memory_space<vmem>>, %arg10: memref<1x32xf32, #tpu.memory_space<vmem>>, %arg11: memref<1x32xf32, #tpu.memory_space<vmem>>, %arg12: memref<1x32xf32, #tpu.memory_space<vmem>>, %arg13: memref<1x8x32xf32, #tpu.memory_space<vmem>>, %arg14: memref<8x32xf32, #tpu.memory_space<vmem>>) attributes {dimension_semantics = [#tpu.dimension_semantics<parallel>, #tpu.dimension_semantics<parallel>], iteration_bounds = array<i64: 2, 1>, scalar_prefetch = 0 : i64, scratch_operands = 1 : i64, tpu.core_type = #tpu.core_type<tc>, window_params = [{transform_indices = @transform_0, window_bounds = array<i64: 1, 8, 32>}, {transform_indices = @transform_1, window_bounds = array<i64: 1, 8, 32>}, {transform_indices = @transform_2, window_bounds = array<i64: 1, 8, 32>}, {pipeline_mode = #tpu.pipeline_mode<synchronous>, transform_indices = @transform_3, window_bounds = array<i64: 32, 32>}, {pipeline_mode = #tpu.pipeline_mode<synchronous>, transform_indices = @transform_4, window_bounds = array<i64: 32, 32>}, {pipeline_mode = #tpu.pipeline_mode<synchronous>, transform_indices = @transform_5, window_bounds = array<i64: 32, 32>}, {pipeline_mode = #tpu.pipeline_mode<synchronous>, transform_indices = @transform_6, window_bounds = array<i64: 32, 32>}, {pipeline_mode = #tpu.pipeline_mode<synchronous>, transform_indices = @transform_7, window_bounds = array<i64: 1, 32>}, {pipeline_mode = #tpu.pipeline_mode<synchronous>, transform_indices = @transform_8, window_bounds = array<i64: 1, 32>}, {pipeline_mode = #tpu.pipeline_mode<synchronous>, transform_indices = @transform_9, window_bounds = array<i64: 1, 32>}, {pipeline_mode = #tpu.pipeline_mode<synchronous>, transform_indices = @transform_10, window_bounds = array<i64: 1, 32>}, {transform_indices = @transform_11, window_bounds = array<i64: 1, 8, 32>}]} {
    %c0 = arith.constant 0 : index
    %c0_0 = arith.constant 0 : index
    %c0_1 = arith.constant 0 : index
    %0 = vector.load %arg2[%c0, %c0_0, %c0_1] : memref<1x8x32xf32, #tpu.memory_space<vmem>>, vector<1x8x32xf32>
    %1 = vector.shape_cast %0 : vector<1x8x32xf32> to vector<8x32xf32>
    %c0_2 = arith.constant 0 : index
    %c0_3 = arith.constant 0 : index
    %2 = vector.load %arg5[%c0_2, %c0_3] : memref<32x32xf32, #tpu.memory_space<vmem>>, vector<32x32xf32>
    %cst = arith.constant dense<0.000000e+00> : vector<8x32xf32>
    %3 = tpu.matmul %1, %2, %cst {dimension_numbers = #tpu.dot_dimension_numbers<[1], [0], [0], [1], [0, 0, 1, 1], [], []>} : vector<8x32xf32>, vector<32x32xf32>, vector<8x32xf32> -> vector<8x32xf32>
    %c0_4 = arith.constant 0 : index
    %c0_5 = arith.constant 0 : index
    %4 = vector.load %arg9[%c0_4, %c0_5] : memref<1x32xf32, #tpu.memory_space<vmem>>, vector<1x32xf32>
    %5 = vector.broadcast %4 : vector<1x32xf32> to vector<8x32xf32>
    %6 = arith.addf %3, %5 : vector<8x32xf32>
    %c0_6 = arith.constant 0 : index
    %c0_7 = arith.constant 0 : index
    %c0_8 = arith.constant 0 : index
    %7 = vector.load %arg3[%c0_6, %c0_7, %c0_8] : memref<1x8x32xf32, #tpu.memory_space<vmem>>, vector<1x8x32xf32>
    %8 = vector.shape_cast %7 : vector<1x8x32xf32> to vector<8x32xf32>
    %c0_9 = arith.constant 0 : index
    %c0_10 = arith.constant 0 : index
    %9 = vector.load %arg6[%c0_9, %c0_10] : memref<32x32xf32, #tpu.memory_space<vmem>>, vector<32x32xf32>
    %cst_11 = arith.constant dense<0.000000e+00> : vector<8x32xf32>
    %10 = tpu.matmul %8, %9, %cst_11 {dimension_numbers = #tpu.dot_dimension_numbers<[1], [0], [0], [1], [0, 0, 1, 1], [], []>} : vector<8x32xf32>, vector<32x32xf32>, vector<8x32xf32> -> vector<8x32xf32>
    %c0_12 = arith.constant 0 : index
    %c0_13 = arith.constant 0 : index
    %11 = vector.load %arg10[%c0_12, %c0_13] : memref<1x32xf32, #tpu.memory_space<vmem>>, vector<1x32xf32>
    %12 = vector.broadcast %11 : vector<1x32xf32> to vector<8x32xf32>
    %13 = arith.addf %10, %12 : vector<8x32xf32>
    %c0_14 = arith.constant 0 : index
    %c0_15 = arith.constant 0 : index
    %c0_16 = arith.constant 0 : index
    %14 = vector.load %arg4[%c0_14, %c0_15, %c0_16] : memref<1x8x32xf32, #tpu.memory_space<vmem>>, vector<1x8x32xf32>
    %15 = vector.shape_cast %14 : vector<1x8x32xf32> to vector<8x32xf32>
    %c0_17 = arith.constant 0 : index
    %c0_18 = arith.constant 0 : index
    %16 = vector.load %arg7[%c0_17, %c0_18] : memref<32x32xf32, #tpu.memory_space<vmem>>, vector<32x32xf32>
    %cst_19 = arith.constant dense<0.000000e+00> : vector<8x32xf32>
    %17 = tpu.matmul %15, %16, %cst_19 {dimension_numbers = #tpu.dot_dimension_numbers<[1], [0], [0], [1], [0, 0, 1, 1], [], []>} : vector<8x32xf32>, vector<32x32xf32>, vector<8x32xf32> -> vector<8x32xf32>
    %c0_20 = arith.constant 0 : index
    %c0_21 = arith.constant 0 : index
    %18 = vector.load %arg11[%c0_20, %c0_21] : memref<1x32xf32, #tpu.memory_space<vmem>>, vector<1x32xf32>
    %19 = vector.broadcast %18 : vector<1x32xf32> to vector<8x32xf32>
    %20 = arith.addf %17, %19 : vector<8x32xf32>
    %21 = vector.extract_strided_slice %6 {offsets = [0, 0], sizes = [8, 8], strides = [1, 1]} : vector<8x32xf32> to vector<8x8xf32>
    %22 = vector.extract_strided_slice %6 {offsets = [0, 8], sizes = [8, 8], strides = [1, 1]} : vector<8x32xf32> to vector<8x8xf32>
    %23 = vector.extract_strided_slice %6 {offsets = [0, 16], sizes = [8, 8], strides = [1, 1]} : vector<8x32xf32> to vector<8x8xf32>
    %24 = vector.extract_strided_slice %6 {offsets = [0, 24], sizes = [8, 8], strides = [1, 1]} : vector<8x32xf32> to vector<8x8xf32>
    %25 = vector.shape_cast %21 : vector<8x8xf32> to vector<1x8x8xf32>
    %26 = vector.shape_cast %22 : vector<8x8xf32> to vector<1x8x8xf32>
    %27 = vector.shape_cast %23 : vector<8x8xf32> to vector<1x8x8xf32>
    %28 = vector.shape_cast %24 : vector<8x8xf32> to vector<1x8x8xf32>
    %29 = tpu.concatenate %25, %26, %27, %28 in 0 : vector<1x8x8xf32>, vector<1x8x8xf32>, vector<1x8x8xf32>, vector<1x8x8xf32> -> vector<4x8x8xf32>
    %30 = vector.extract_strided_slice %13 {offsets = [0, 0], sizes = [8, 8], strides = [1, 1]} : vector<8x32xf32> to vector<8x8xf32>
    %31 = vector.extract_strided_slice %13 {offsets = [0, 8], sizes = [8, 8], strides = [1, 1]} : vector<8x32xf32> to vector<8x8xf32>
    %32 = vector.extract_strided_slice %13 {offsets = [0, 16], sizes = [8, 8], strides = [1, 1]} : vector<8x32xf32> to vector<8x8xf32>
    %33 = vector.extract_strided_slice %13 {offsets = [0, 24], sizes = [8, 8], strides = [1, 1]} : vector<8x32xf32> to vector<8x8xf32>
    %34 = vector.shape_cast %30 : vector<8x8xf32> to vector<1x8x8xf32>
    %35 = vector.shape_cast %31 : vector<8x8xf32> to vector<1x8x8xf32>
    %36 = vector.shape_cast %32 : vector<8x8xf32> to vector<1x8x8xf32>
    %37 = vector.shape_cast %33 : vector<8x8xf32> to vector<1x8x8xf32>
    %38 = tpu.concatenate %34, %35, %36, %37 in 0 : vector<1x8x8xf32>, vector<1x8x8xf32>, vector<1x8x8xf32>, vector<1x8x8xf32> -> vector<4x8x8xf32>
    %39 = vector.extract_strided_slice %20 {offsets = [0, 0], sizes = [8, 8], strides = [1, 1]} : vector<8x32xf32> to vector<8x8xf32>
    %40 = vector.extract_strided_slice %20 {offsets = [0, 8], sizes = [8, 8], strides = [1, 1]} : vector<8x32xf32> to vector<8x8xf32>
    %41 = vector.extract_strided_slice %20 {offsets = [0, 16], sizes = [8, 8], strides = [1, 1]} : vector<8x32xf32> to vector<8x8xf32>
    %42 = vector.extract_strided_slice %20 {offsets = [0, 24], sizes = [8, 8], strides = [1, 1]} : vector<8x32xf32> to vector<8x8xf32>
    %43 = vector.shape_cast %39 : vector<8x8xf32> to vector<1x8x8xf32>
    %44 = vector.shape_cast %40 : vector<8x8xf32> to vector<1x8x8xf32>
    %45 = vector.shape_cast %41 : vector<8x8xf32> to vector<1x8x8xf32>
    %46 = vector.shape_cast %42 : vector<8x8xf32> to vector<1x8x8xf32>
    %47 = tpu.concatenate %43, %44, %45, %46 in 0 : vector<1x8x8xf32>, vector<1x8x8xf32>, vector<1x8x8xf32>, vector<1x8x8xf32> -> vector<4x8x8xf32>
    "tpu.trace_start"() <{level = 10 : i32, message = "hqd,hkd->hqk"}> : () -> ()
    %cst_22 = arith.constant dense<0.000000e+00> : vector<4x8x8xf32>
    %48 = tpu.matmul %29, %38, %cst_22 {dimension_numbers = #tpu.dot_dimension_numbers<[2], [2], [1], [1], [0, 0, 0, 1, 1, 1], [0], [0]>} : vector<4x8x8xf32>, vector<4x8x8xf32>, vector<4x8x8xf32> -> vector<4x8x8xf32>
    "tpu.trace_stop"() : () -> ()
    %cst_23 = arith.constant dense<0xFF800000> : vector<4x8xf32>
    %49 = vector.multi_reduction <maximumf>, %48, %cst_23 [2] : vector<4x8x8xf32> to vector<4x8xf32>
    %50 = vector.shape_cast %49 : vector<4x8xf32> to vector<4x8x1xf32>
    %51 = vector.broadcast %50 : vector<4x8x1xf32> to vector<4x8x8xf32>
    %52 = arith.subf %48, %51 : vector<4x8x8xf32>
    %53 = math.exp %52 : vector<4x8x8xf32>
    %cst_24 = arith.constant dense<0.000000e+00> : vector<4x8xf32>
    %54 = vector.multi_reduction <add>, %53, %cst_24 [2] : vector<4x8x8xf32> to vector<4x8xf32>
    %55 = vector.shape_cast %54 : vector<4x8xf32> to vector<4x8x1xf32>
    "tpu.trace_start"() <{level = 10 : i32, message = "hqk,hkd->hqd"}> : () -> ()
    %cst_25 = arith.constant dense<0.000000e+00> : vector<4x8x8xf32>
    %56 = tpu.matmul %53, %47, %cst_25 {dimension_numbers = #tpu.dot_dimension_numbers<[2], [1], [1], [2], [0, 0, 0, 1, 1, 2], [0], [0]>} : vector<4x8x8xf32>, vector<4x8x8xf32>, vector<4x8x8xf32> -> vector<4x8x8xf32>
    "tpu.trace_stop"() : () -> ()
    %57 = tpu.reciprocal %55 {approx = true} : vector<4x8x1xf32> -> vector<4x8x1xf32>
    %58 = vector.broadcast %57 : vector<4x8x1xf32> to vector<4x8x8xf32>
    %59 = arith.mulf %56, %58 : vector<4x8x8xf32>
    %60 = vector.extract_strided_slice %59 {offsets = [0, 0, 0], sizes = [1, 8, 8], strides = [1, 1, 1]} : vector<4x8x8xf32> to vector<1x8x8xf32>
    %61 = vector.shape_cast %60 : vector<1x8x8xf32> to vector<8x8xf32>
    %c0_26 = arith.constant 0 : index
    %c0_27 = arith.constant 0 : index
    %62 = vector.load %arg14[%c0_26, %c0_27] : memref<8x32xf32, #tpu.memory_space<vmem>>, vector<8x8xf32>
    tpu.vector_store %arg14[%c0_26, %c0_27], %61 {strides = array<i32>} : memref<8x32xf32, #tpu.memory_space<vmem>>, vector<8x8xf32>,
    %63 = vector.extract_strided_slice %59 {offsets = [1, 0, 0], sizes = [1, 8, 8], strides = [1, 1, 1]} : vector<4x8x8xf32> to vector<1x8x8xf32>
    %64 = vector.shape_cast %63 : vector<1x8x8xf32> to vector<8x8xf32>
    %c0_28 = arith.constant 0 : index
    %c8 = arith.constant 8 : index
    %65 = vector.load %arg14[%c0_28, %c8] : memref<8x32xf32, #tpu.memory_space<vmem>>, vector<8x8xf32>
    tpu.vector_store %arg14[%c0_28, %c8], %64 {strides = array<i32>} : memref<8x32xf32, #tpu.memory_space<vmem>>, vector<8x8xf32>,
    %66 = vector.extract_strided_slice %59 {offsets = [2, 0, 0], sizes = [1, 8, 8], strides = [1, 1, 1]} : vector<4x8x8xf32> to vector<1x8x8xf32>
    %67 = vector.shape_cast %66 : vector<1x8x8xf32> to vector<8x8xf32>
    %c0_29 = arith.constant 0 : index
    %c16 = arith.constant 16 : index
    %68 = vector.load %arg14[%c0_29, %c16] : memref<8x32xf32, #tpu.memory_space<vmem>>, vector<8x8xf32>
    tpu.vector_store %arg14[%c0_29, %c16], %67 {strides = array<i32>} : memref<8x32xf32, #tpu.memory_space<vmem>>, vector<8x8xf32>,
    %69 = vector.extract_strided_slice %59 {offsets = [3, 0, 0], sizes = [1, 8, 8], strides = [1, 1, 1]} : vector<4x8x8xf32> to vector<1x8x8xf32>
    %70 = vector.shape_cast %69 : vector<1x8x8xf32> to vector<8x8xf32>
    %c0_30 = arith.constant 0 : index
    %c24 = arith.constant 24 : index
    %71 = vector.load %arg14[%c0_30, %c24] : memref<8x32xf32, #tpu.memory_space<vmem>>, vector<8x8xf32>
    tpu.vector_store %arg14[%c0_30, %c24], %70 {strides = array<i32>} : memref<8x32xf32, #tpu.memory_space<vmem>>, vector<8x8xf32>,
    %c0_31 = arith.constant 0 : index
    %c0_32 = arith.constant 0 : index
    %72 = vector.load %arg14[%c0_31, %c0_32] : memref<8x32xf32, #tpu.memory_space<vmem>>, vector<8x32xf32>
    %c0_33 = arith.constant 0 : index
    %c0_34 = arith.constant 0 : index
    %73 = vector.load %arg8[%c0_33, %c0_34] : memref<32x32xf32, #tpu.memory_space<vmem>>, vector<32x32xf32>
    %cst_35 = arith.constant dense<0.000000e+00> : vector<8x32xf32>
    %74 = tpu.matmul %72, %73, %cst_35 {dimension_numbers = #tpu.dot_dimension_numbers<[1], [0], [0], [1], [0, 0, 1, 1], [], []>} : vector<8x32xf32>, vector<32x32xf32>, vector<8x32xf32> -> vector<8x32xf32>
    %c0_36 = arith.constant 0 : index
    %c0_37 = arith.constant 0 : index
    %75 = vector.load %arg12[%c0_36, %c0_37] : memref<1x32xf32, #tpu.memory_space<vmem>>, vector<1x32xf32>
    %76 = vector.broadcast %75 : vector<1x32xf32> to vector<8x32xf32>
    %77 = arith.addf %74, %76 : vector<8x32xf32>
    %c0_38 = arith.constant 0 : index
    %c0_39 = arith.constant 0 : index
    %c0_40 = arith.constant 0 : index
    %78 = vector.load %arg13[%c0_38, %c0_39, %c0_40] : memref<1x8x32xf32, #tpu.memory_space<vmem>>, vector<1x8x32xf32>
    %79 = vector.shape_cast %78 : vector<1x8x32xf32> to vector<8x32xf32>
    %80 = vector.shape_cast %77 : vector<8x32xf32> to vector<1x8x32xf32>
    tpu.vector_store %arg13[%c0_38, %c0_39, %c0_40], %80 {strides = array<i32>} : memref<1x8x32xf32, #tpu.memory_space<vmem>>, vector<1x8x32xf32>,
    return
  }
  func.func @transform_0(%arg0: i32, %arg1: i32) -> (i32, i32, i32) {
    %c0_i32 = arith.constant 0 : i32
    %c0_i32_0 = arith.constant 0 : i32
    return %arg0, %arg1, %c0_i32 : i32, i32, i32
  }
  func.func @transform_1(%arg0: i32, %arg1: i32) -> (i32, i32, i32) {
    %c0_i32 = arith.constant 0 : i32
    %c0_i32_0 = arith.constant 0 : i32
    %c0_i32_1 = arith.constant 0 : i32
    return %arg0, %c0_i32, %c0_i32_0 : i32, i32, i32
  }
  func.func @transform_2(%arg0: i32, %arg1: i32) -> (i32, i32, i32) {
    %c0_i32 = arith.constant 0 : i32
    %c0_i32_0 = arith.constant 0 : i32
    %c0_i32_1 = arith.constant 0 : i32
    return %arg0, %c0_i32, %c0_i32_0 : i32, i32, i32
  }
  func.func @transform_3(%arg0: i32, %arg1: i32) -> (i32, i32) {
    %c0_i32 = arith.constant 0 : i32
    %c0_i32_0 = arith.constant 0 : i32
    %c0_i32_1 = arith.constant 0 : i32
    return %c0_i32, %c0_i32_0 : i32, i32
  }
  func.func @transform_4(%arg0: i32, %arg1: i32) -> (i32, i32) {
    %c0_i32 = arith.constant 0 : i32
    %c0_i32_0 = arith.constant 0 : i32
    %c0_i32_1 = arith.constant 0 : i32
    return %c0_i32, %c0_i32_0 : i32, i32
  }
  func.func @transform_5(%arg0: i32, %arg1: i32) -> (i32, i32) {
    %c0_i32 = arith.constant 0 : i32
    %c0_i32_0 = arith.constant 0 : i32
    %c0_i32_1 = arith.constant 0 : i32
    return %c0_i32, %c0_i32_0 : i32, i32
  }
  func.func @transform_6(%arg0: i32, %arg1: i32) -> (i32, i32) {
    %c0_i32 = arith.constant 0 : i32
    %c0_i32_0 = arith.constant 0 : i32
    %c0_i32_1 = arith.constant 0 : i32
    return %c0_i32, %c0_i32_0 : i32, i32
  }
  func.func @transform_7(%arg0: i32, %arg1: i32) -> (i32, i32) {
    %c0_i32 = arith.constant 0 : i32
    %c0_i32_0 = arith.constant 0 : i32
    %c0_i32_1 = arith.constant 0 : i32
    return %c0_i32, %c0_i32_0 : i32, i32
  }
  func.func @transform_8(%arg0: i32, %arg1: i32) -> (i32, i32) {
    %c0_i32 = arith.constant 0 : i32
    %c0_i32_0 = arith.constant 0 : i32
    %c0_i32_1 = arith.constant 0 : i32
    return %c0_i32, %c0_i32_0 : i32, i32
  }
  func.func @transform_9(%arg0: i32, %arg1: i32) -> (i32, i32) {
    %c0_i32 = arith.constant 0 : i32
    %c0_i32_0 = arith.constant 0 : i32
    %c0_i32_1 = arith.constant 0 : i32
    return %c0_i32, %c0_i32_0 : i32, i32
  }
  func.func @transform_10(%arg0: i32, %arg1: i32) -> (i32, i32) {
    %c0_i32 = arith.constant 0 : i32
    %c0_i32_0 = arith.constant 0 : i32
    %c0_i32_1 = arith.constant 0 : i32
    return %c0_i32, %c0_i32_0 : i32, i32
  }
  func.func @transform_11(%arg0: i32, %arg1: i32) -> (i32, i32, i32) {
    %c0_i32 = arith.constant 0 : i32
    %c0_i32_0 = arith.constant 0 : i32
    return %arg0, %arg1, %c0_i32 : i32, i32, i32
  }
}

module attributes {stable_mosaic.version = 11 : i64} {
  func.func @mha_kernel(%arg0: i32, %arg1: i32, %arg2: memref<1x8x32xf32, #tpu.memory_space<vmem>>, %arg3: memref<1x8x32xf32, #tpu.memory_space<vmem>>, %arg4: memref<1x8x32xf32, #tpu.memory_space<vmem>>, %arg5: memref<32x32xf32, #tpu.memory_space<vmem>>, %arg6: memref<32x32xf32, #tpu.memory_space<vmem>>, %arg7: memref<32x32xf32, #tpu.memory_space<vmem>>, %arg8: memref<32x32xf32, #tpu.memory_space<vmem>>, %arg9: memref<1x32xf32, #tpu.memory_space<vmem>>, %arg10: memref<1x32xf32, #tpu.memory_space<vmem>>, %arg11: memref<1x32xf32, #tpu.memory_space<vmem>>, %arg12: memref<1x32xf32, #tpu.memory_space<vmem>>, %arg13: memref<1x8x32xf32, #tpu.memory_space<vmem>>, %arg14: memref<8x32xf32, #tpu.memory_space<vmem>>) attributes {dimension_semantics = [#tpu.dimension_semantics<parallel>, #tpu.dimension_semantics<parallel>], iteration_bounds = array<i64: 2, 1>, scalar_prefetch = 0 : i64, scratch_operands = 1 : i64, tpu.core_type = #tpu.core_type<tc>, window_params = [{transform_indices = @transform_0, window_bounds = array<i64: 1, 8, 32>}, {transform_indices = @transform_1, window_bounds = array<i64: 1, 8, 32>}, {transform_indices = @transform_2, window_bounds = array<i64: 1, 8, 32>}, {pipeline_mode = #tpu.pipeline_mode<synchronous>, transform_indices = @transform_3, window_bounds = array<i64: 32, 32>}, {pipeline_mode = #tpu.pipeline_mode<synchronous>, transform_indices = @transform_4, window_bounds = array<i64: 32, 32>}, {pipeline_mode = #tpu.pipeline_mode<synchronous>, transform_indices = @transform_5, window_bounds = array<i64: 32, 32>}, {pipeline_mode = #tpu.pipeline_mode<synchronous>, transform_indices = @transform_6, window_bounds = array<i64: 32, 32>}, {pipeline_mode = #tpu.pipeline_mode<synchronous>, transform_indices = @transform_7, window_bounds = array<i64: 1, 32>}, {pipeline_mode = #tpu.pipeline_mode<synchronous>, transform_indices = @transform_8, window_bounds = array<i64: 1, 32>}, {pipeline_mode = #tpu.pipeline_mode<synchronous>, transform_indices = @transform_9, window_bounds = array<i64: 1, 32>}, {pipeline_mode = #tpu.pipeline_mode<synchronous>, transform_indices = @transform_10, window_bounds = array<i64: 1, 32>}, {transform_indices = @transform_11, window_bounds = array<i64: 1, 8, 32>}]} {
    %c0 = arith.constant 0 : index
    %c0_0 = arith.constant 0 : index
    %c0_1 = arith.constant 0 : index
    %0 = vector.load %arg2[%c0, %c0_0, %c0_1] : memref<1x8x32xf32, #tpu.memory_space<vmem>>, vector<1x8x32xf32>
    %1 = vector.shape_cast %0 : vector<1x8x32xf32> to vector<8x32xf32>
    %c0_2 = arith.constant 0 : index
    %c0_3 = arith.constant 0 : index
    %2 = vector.load %arg5[%c0_2, %c0_3] : memref<32x32xf32, #tpu.memory_space<vmem>>, vector<32x32xf32>
    %cst = arith.constant dense<0.000000e+00> : vector<8x32xf32>
    %3 = tpu.matmul %1, %2, %cst {dimension_numbers = #tpu.dot_dimension_numbers<[1], [0], [0], [1], [0, 0, 1, 1], [], []>} : vector<8x32xf32>, vector<32x32xf32>, vector<8x32xf32> -> vector<8x32xf32>
    %c0_4 = arith.constant 0 : index
    %c0_5 = arith.constant 0 : index
    %4 = vector.load %arg9[%c0_4, %c0_5] : memref<1x32xf32, #tpu.memory_space<vmem>>, vector<1x32xf32>
    %5 = vector.broadcast %4 : vector<1x32xf32> to vector<8x32xf32>
    %6 = arith.addf %3, %5 : vector<8x32xf32>
    %c0_6 = arith.constant 0 : index
    %c0_7 = arith.constant 0 : index
    %c0_8 = arith.constant 0 : index
    %7 = vector.load %arg3[%c0_6, %c0_7, %c0_8] : memref<1x8x32xf32, #tpu.memory_space<vmem>>, vector<1x8x32xf32>
    %8 = vector.shape_cast %7 : vector<1x8x32xf32> to vector<8x32xf32>
    %c0_9 = arith.constant 0 : index
    %c0_10 = arith.constant 0 : index
    %9 = vector.load %arg6[%c0_9, %c0_10] : memref<32x32xf32, #tpu.memory_space<vmem>>, vector<32x32xf32>
    %cst_11 = arith.constant dense<0.000000e+00> : vector<8x32xf32>
    %10 = tpu.matmul %8, %9, %cst_11 {dimension_numbers = #tpu.dot_dimension_numbers<[1], [0], [0], [1], [0, 0, 1, 1], [], []>} : vector<8x32xf32>, vector<32x32xf32>, vector<8x32xf32> -> vector<8x32xf32>
    %c0_12 = arith.constant 0 : index
    %c0_13 = arith.constant 0 : index
    %11 = vector.load %arg10[%c0_12, %c0_13] : memref<1x32xf32, #tpu.memory_space<vmem>>, vector<1x32xf32>
    %12 = vector.broadcast %11 : vector<1x32xf32> to vector<8x32xf32>
    %13 = arith.addf %10, %12 : vector<8x32xf32>
    %c0_14 = arith.constant 0 : index
    %c0_15 = arith.constant 0 : index
    %c0_16 = arith.constant 0 : index
    %14 = vector.load %arg4[%c0_14, %c0_15, %c0_16] : memref<1x8x32xf32, #tpu.memory_space<vmem>>, vector<1x8x32xf32>
    %15 = vector.shape_cast %14 : vector<1x8x32xf32> to vector<8x32xf32>
    %c0_17 = arith.constant 0 : index
    %c0_18 = arith.constant 0 : index
    %16 = vector.load %arg7[%c0_17, %c0_18] : memref<32x32xf32, #tpu.memory_space<vmem>>, vector<32x32xf32>
    %cst_19 = arith.constant dense<0.000000e+00> : vector<8x32xf32>
    %17 = tpu.matmul %15, %16, %cst_19 {dimension_numbers = #tpu.dot_dimension_numbers<[1], [0], [0], [1], [0, 0, 1, 1], [], []>} : vector<8x32xf32>, vector<32x32xf32>, vector<8x32xf32> -> vector<8x32xf32>
    %c0_20 = arith.constant 0 : index
    %c0_21 = arith.constant 0 : index
    %18 = vector.load %arg11[%c0_20, %c0_21] : memref<1x32xf32, #tpu.memory_space<vmem>>, vector<1x32xf32>
    %19 = vector.broadcast %18 : vector<1x32xf32> to vector<8x32xf32>
    %20 = arith.addf %17, %19 : vector<8x32xf32>
    %21 = vector.extract_strided_slice %6 {offsets = [0, 0], sizes = [8, 8], strides = [1, 1]} : vector<8x32xf32> to vector<8x8xf32>
    %22 = vector.extract_strided_slice %6 {offsets = [0, 8], sizes = [8, 8], strides = [1, 1]} : vector<8x32xf32> to vector<8x8xf32>
    %23 = vector.extract_strided_slice %6 {offsets = [0, 16], sizes = [8, 8], strides = [1, 1]} : vector<8x32xf32> to vector<8x8xf32>
    %24 = vector.extract_strided_slice %6 {offsets = [0, 24], sizes = [8, 8], strides = [1, 1]} : vector<8x32xf32> to vector<8x8xf32>
    %25 = vector.shape_cast %21 : vector<8x8xf32> to vector<1x8x8xf32>
    %26 = vector.shape_cast %22 : vector<8x8xf32> to vector<1x8x8xf32>
    %27 = vector.shape_cast %23 : vector<8x8xf32> to vector<1x8x8xf32>
    %28 = vector.shape_cast %24 : vector<8x8xf32> to vector<1x8x8xf32>
    %29 = tpu.concatenate %25, %26, %27, %28 in 0 : vector<1x8x8xf32>, vector<1x8x8xf32>, vector<1x8x8xf32>, vector<1x8x8xf32> -> vector<4x8x8xf32>
    %30 = vector.extract_strided_slice %13 {offsets = [0, 0], sizes = [8, 8], strides = [1, 1]} : vector<8x32xf32> to vector<8x8xf32>
    %31 = vector.extract_strided_slice %13 {offsets = [0, 8], sizes = [8, 8], strides = [1, 1]} : vector<8x32xf32> to vector<8x8xf32>
    %32 = vector.extract_strided_slice %13 {offsets = [0, 16], sizes = [8, 8], strides = [1, 1]} : vector<8x32xf32> to vector<8x8xf32>
    %33 = vector.extract_strided_slice %13 {offsets = [0, 24], sizes = [8, 8], strides = [1, 1]} : vector<8x32xf32> to vector<8x8xf32>
    %34 = vector.shape_cast %30 : vector<8x8xf32> to vector<1x8x8xf32>
    %35 = vector.shape_cast %31 : vector<8x8xf32> to vector<1x8x8xf32>
    %36 = vector.shape_cast %32 : vector<8x8xf32> to vector<1x8x8xf32>
    %37 = vector.shape_cast %33 : vector<8x8xf32> to vector<1x8x8xf32>
    %38 = tpu.concatenate %34, %35, %36, %37 in 0 : vector<1x8x8xf32>, vector<1x8x8xf32>, vector<1x8x8xf32>, vector<1x8x8xf32> -> vector<4x8x8xf32>
    %39 = vector.extract_strided_slice %20 {offsets = [0, 0], sizes = [8, 8], strides = [1, 1]} : vector<8x32xf32> to vector<8x8xf32>
    %40 = vector.extract_strided_slice %20 {offsets = [0, 8], sizes = [8, 8], strides = [1, 1]} : vector<8x32xf32> to vector<8x8xf32>
    %41 = vector.extract_strided_slice %20 {offsets = [0, 16], sizes = [8, 8], strides = [1, 1]} : vector<8x32xf32> to vector<8x8xf32>
    %42 = vector.extract_strided_slice %20 {offsets = [0, 24], sizes = [8, 8], strides = [1, 1]} : vector<8x32xf32> to vector<8x8xf32>
    %43 = vector.shape_cast %39 : vector<8x8xf32> to vector<1x8x8xf32>
    %44 = vector.shape_cast %40 : vector<8x8xf32> to vector<1x8x8xf32>
    %45 = vector.shape_cast %41 : vector<8x8xf32> to vector<1x8x8xf32>
    %46 = vector.shape_cast %42 : vector<8x8xf32> to vector<1x8x8xf32>
    %47 = tpu.concatenate %43, %44, %45, %46 in 0 : vector<1x8x8xf32>, vector<1x8x8xf32>, vector<1x8x8xf32>, vector<1x8x8xf32> -> vector<4x8x8xf32>
    "tpu.trace_start"() <{level = 10 : i32, message = "hqd,hkd->hqk"}> : () -> ()
    %cst_22 = arith.constant dense<0.000000e+00> : vector<4x8x8xf32>
    %48 = tpu.matmul %29, %38, %cst_22 {dimension_numbers = #tpu.dot_dimension_numbers<[2], [2], [1], [1], [0, 0, 0, 1, 1, 1], [0], [0]>} : vector<4x8x8xf32>, vector<4x8x8xf32>, vector<4x8x8xf32> -> vector<4x8x8xf32>
    "tpu.trace_stop"() : () -> ()
    %cst_23 = arith.constant dense<0xFF800000> : vector<4x8xf32>
    %49 = vector.multi_reduction <maximumf>, %48, %cst_23 [2] : vector<4x8x8xf32> to vector<4x8xf32>
    %50 = vector.shape_cast %49 : vector<4x8xf32> to vector<4x8x1xf32>
    %51 = vector.broadcast %50 : vector<4x8x1xf32> to vector<4x8x8xf32>
    %52 = arith.subf %48, %51 : vector<4x8x8xf32>
    %53 = math.exp %52 : vector<4x8x8xf32>
    %cst_24 = arith.constant dense<0.000000e+00> : vector<4x8xf32>
    %54 = vector.multi_reduction <add>, %53, %cst_24 [2] : vector<4x8x8xf32> to vector<4x8xf32>
    %55 = vector.shape_cast %54 : vector<4x8xf32> to vector<4x8x1xf32>
    "tpu.trace_start"() <{level = 10 : i32, message = "hqk,hkd->hqd"}> : () -> ()
    %cst_25 = arith.constant dense<0.000000e+00> : vector<4x8x8xf32>
    %56 = tpu.matmul %53, %47, %cst_25 {dimension_numbers = #tpu.dot_dimension_numbers<[2], [1], [1], [2], [0, 0, 0, 1, 1, 2], [0], [0]>} : vector<4x8x8xf32>, vector<4x8x8xf32>, vector<4x8x8xf32> -> vector<4x8x8xf32>
    "tpu.trace_stop"() : () -> ()
    %57 = tpu.reciprocal %55 {approx = true} : vector<4x8x1xf32> -> vector<4x8x1xf32>
    %58 = vector.broadcast %57 : vector<4x8x1xf32> to vector<4x8x8xf32>
    %59 = arith.mulf %56, %58 : vector<4x8x8xf32>
    %60 = vector.extract_strided_slice %59 {offsets = [0, 0, 0], sizes = [1, 8, 8], strides = [1, 1, 1]} : vector<4x8x8xf32> to vector<1x8x8xf32>
    %61 = vector.shape_cast %60 : vector<1x8x8xf32> to vector<8x8xf32>
    %c0_26 = arith.constant 0 : index
    %c0_27 = arith.constant 0 : index
    %62 = vector.load %arg14[%c0_26, %c0_27] : memref<8x32xf32, #tpu.memory_space<vmem>>, vector<8x8xf32>
    tpu.vector_store %arg14[%c0_26, %c0_27], %61 {strides = array<i32>} : memref<8x32xf32, #tpu.memory_space<vmem>>, vector<8x8xf32>,
    %63 = vector.extract_strided_slice %59 {offsets = [1, 0, 0], sizes = [1, 8, 8], strides = [1, 1, 1]} : vector<4x8x8xf32> to vector<1x8x8xf32>
    %64 = vector.shape_cast %63 : vector<1x8x8xf32> to vector<8x8xf32>
    %c0_28 = arith.constant 0 : index
    %c8 = arith.constant 8 : index
    %65 = vector.load %arg14[%c0_28, %c8] : memref<8x32xf32, #tpu.memory_space<vmem>>, vector<8x8xf32>
    tpu.vector_store %arg14[%c0_28, %c8], %64 {strides = array<i32>} : memref<8x32xf32, #tpu.memory_space<vmem>>, vector<8x8xf32>,
    %66 = vector.extract_strided_slice %59 {offsets = [2, 0, 0], sizes = [1, 8, 8], strides = [1, 1, 1]} : vector<4x8x8xf32> to vector<1x8x8xf32>
    %67 = vector.shape_cast %66 : vector<1x8x8xf32> to vector<8x8xf32>
    %c0_29 = arith.constant 0 : index
    %c16 = arith.constant 16 : index
    %68 = vector.load %arg14[%c0_29, %c16] : memref<8x32xf32, #tpu.memory_space<vmem>>, vector<8x8xf32>
    tpu.vector_store %arg14[%c0_29, %c16], %67 {strides = array<i32>} : memref<8x32xf32, #tpu.memory_space<vmem>>, vector<8x8xf32>,
    %69 = vector.extract_strided_slice %59 {offsets = [3, 0, 0], sizes = [1, 8, 8], strides = [1, 1, 1]} : vector<4x8x8xf32> to vector<1x8x8xf32>
    %70 = vector.shape_cast %69 : vector<1x8x8xf32> to vector<8x8xf32>
    %c0_30 = arith.constant 0 : index
    %c24 = arith.constant 24 : index
    %71 = vector.load %arg14[%c0_30, %c24] : memref<8x32xf32, #tpu.memory_space<vmem>>, vector<8x8xf32>
    tpu.vector_store %arg14[%c0_30, %c24], %70 {strides = array<i32>} : memref<8x32xf32, #tpu.memory_space<vmem>>, vector<8x8xf32>,
    %c0_31 = arith.constant 0 : index
    %c0_32 = arith.constant 0 : index
    %72 = vector.load %arg14[%c0_31, %c0_32] : memref<8x32xf32, #tpu.memory_space<vmem>>, vector<8x32xf32>
    %c0_33 = arith.constant 0 : index
    %c0_34 = arith.constant 0 : index
    %73 = vector.load %arg8[%c0_33, %c0_34] : memref<32x32xf32, #tpu.memory_space<vmem>>, vector<32x32xf32>
    %cst_35 = arith.constant dense<0.000000e+00> : vector<8x32xf32>
    %74 = tpu.matmul %72, %73, %cst_35 {dimension_numbers = #tpu.dot_dimension_numbers<[1], [0], [0], [1], [0, 0, 1, 1], [], []>} : vector<8x32xf32>, vector<32x32xf32>, vector<8x32xf32> -> vector<8x32xf32>
    %c0_36 = arith.constant 0 : index
    %c0_37 = arith.constant 0 : index
    %75 = vector.load %arg12[%c0_36, %c0_37] : memref<1x32xf32, #tpu.memory_space<vmem>>, vector<1x32xf32>
    %76 = vector.broadcast %75 : vector<1x32xf32> to vector<8x32xf32>
    %77 = arith.addf %74, %76 : vector<8x32xf32>
    %c0_38 = arith.constant 0 : index
    %c0_39 = arith.constant 0 : index
    %c0_40 = arith.constant 0 : index
    %78 = vector.load %arg13[%c0_38, %c0_39, %c0_40] : memref<1x8x32xf32, #tpu.memory_space<vmem>>, vector<1x8x32xf32>
    %79 = vector.shape_cast %78 : vector<1x8x32xf32> to vector<8x32xf32>
    %80 = vector.shape_cast %77 : vector<8x32xf32> to vector<1x8x32xf32>
    tpu.vector_store %arg13[%c0_38, %c0_39, %c0_40], %80 {strides = array<i32>} : memref<1x8x32xf32, #tpu.memory_space<vmem>>, vector<1x8x32xf32>,
    return
  }
  func.func @transform_0(%arg0: i32, %arg1: i32) -> (i32, i32, i32) {
    %c0_i32 = arith.constant 0 : i32
    %c0_i32_0 = arith.constant 0 : i32
    return %arg0, %arg1, %c0_i32 : i32, i32, i32
  }
  func.func @transform_1(%arg0: i32, %arg1: i32) -> (i32, i32, i32) {
    %c0_i32 = arith.constant 0 : i32
    %c0_i32_0 = arith.constant 0 : i32
    %c0_i32_1 = arith.constant 0 : i32
    return %arg0, %c0_i32, %c0_i32_0 : i32, i32, i32
  }
  func.func @transform_2(%arg0: i32, %arg1: i32) -> (i32, i32, i32) {
    %c0_i32 = arith.constant 0 : i32
    %c0_i32_0 = arith.constant 0 : i32
    %c0_i32_1 = arith.constant 0 : i32
    return %arg0, %c0_i32, %c0_i32_0 : i32, i32, i32
  }
  func.func @transform_3(%arg0: i32, %arg1: i32) -> (i32, i32) {
    %c0_i32 = arith.constant 0 : i32
    %c0_i32_0 = arith.constant 0 : i32
    %c0_i32_1 = arith.constant 0 : i32
    return %c0_i32, %c0_i32_0 : i32, i32
  }
  func.func @transform_4(%arg0: i32, %arg1: i32) -> (i32, i32) {
    %c0_i32 = arith.constant 0 : i32
    %c0_i32_0 = arith.constant 0 : i32
    %c0_i32_1 = arith.constant 0 : i32
    return %c0_i32, %c0_i32_0 : i32, i32
  }
  func.func @transform_5(%arg0: i32, %arg1: i32) -> (i32, i32) {
    %c0_i32 = arith.constant 0 : i32
    %c0_i32_0 = arith.constant 0 : i32
    %c0_i32_1 = arith.constant 0 : i32
    return %c0_i32, %c0_i32_0 : i32, i32
  }
  func.func @transform_6(%arg0: i32, %arg1: i32) -> (i32, i32) {
    %c0_i32 = arith.constant 0 : i32
    %c0_i32_0 = arith.constant 0 : i32
    %c0_i32_1 = arith.constant 0 : i32
    return %c0_i32, %c0_i32_0 : i32, i32
  }
  func.func @transform_7(%arg0: i32, %arg1: i32) -> (i32, i32) {
    %c0_i32 = arith.constant 0 : i32
    %c0_i32_0 = arith.constant 0 : i32
    %c0_i32_1 = arith.constant 0 : i32
    return %c0_i32, %c0_i32_0 : i32, i32
  }
  func.func @transform_8(%arg0: i32, %arg1: i32) -> (i32, i32) {
    %c0_i32 = arith.constant 0 : i32
    %c0_i32_0 = arith.constant 0 : i32
    %c0_i32_1 = arith.constant 0 : i32
    return %c0_i32, %c0_i32_0 : i32, i32
  }
  func.func @transform_9(%arg0: i32, %arg1: i32) -> (i32, i32) {
    %c0_i32 = arith.constant 0 : i32
    %c0_i32_0 = arith.constant 0 : i32
    %c0_i32_1 = arith.constant 0 : i32
    return %c0_i32, %c0_i32_0 : i32, i32
  }
  func.func @transform_10(%arg0: i32, %arg1: i32) -> (i32, i32) {
    %c0_i32 = arith.constant 0 : i32
    %c0_i32_0 = arith.constant 0 : i32
    %c0_i32_1 = arith.constant 0 : i32
    return %c0_i32, %c0_i32_0 : i32, i32
  }
  func.func @transform_11(%arg0: i32, %arg1: i32) -> (i32, i32, i32) {
    %c0_i32 = arith.constant 0 : i32
    %c0_i32_0 = arith.constant 0 : i32
    return %arg0, %arg1, %c0_i32 : i32, i32, i32
  }
}

</mosaic_0001>

<bundles_post_ra>
// kernel: tpu_custom_call.1
= control target key start
LH: loop header
LB: loop body
LE: loop exit
PB: predicated region body
PF: predicated region fallthrough
CT: control target
= control target key end

     0   :  { %s2922_s0 = inlined_call_operand.hbm [shape: f32[2,8,32], index: 0, kind: input, shape index: {}]   ;;  %s2923_s1 = inlined_call_operand.hbm [shape: f32[2,8,32], index: 1, kind: input, shape index: {}]   ;;  %s2924_s2 = inlined_call_operand.hbm [shape: f32[2,8,32], index: 2, kind: input, shape index: {}]   ;;  %s2925_s3 = inlined_call_operand.hbm [shape: f32[32,32], index: 3, kind: input, shape index: {}]   ;;  %s2926_s4 = inlined_call_operand.hbm [shape: f32[32,32], index: 4, kind: input, shape index: {}]   ;;  %s2927_s5 = inlined_call_operand.hbm [shape: f32[32,32], index: 5, kind: input, shape index: {}]   ;;  %s2928_s6 = inlined_call_operand.hbm [shape: f32[32,32], index: 6, kind: input, shape index: {}]   ;;  %s2929_s7 = inlined_call_operand.vmem [shape: f32[1,32], index: 7, kind: input, shape index: {}]   ;;  %s2930_s8 = inlined_call_operand.vmem [shape: f32[1,32], index: 8, kind: input, shape index: {}]   ;;  %s2931_s9 = inlined_call_operand.vmem [shape: f32[1,32], index: 9, kind: input, shape index: {}]   ;;  %s2932_s10 = inlined_call_operand.vmem [shape: f32[1,32], index: 10, kind: input, shape index: {}]   ;;  %s2933_s11 = inlined_call_operand.hbm [shape: f32[2,8,32], index: 11, kind: output, shape index: {}]  }
   0x1   :  { %2960 = sst [smem:[#allocation29_spill]] %s2923_s1 }
   0x2   :  { %2961 = sst [smem:[#allocation30_spill]] %s2925_s3 }
   0x3   :  { %2962 = sst [smem:[#allocation31_spill]] %s2927_s5 }
   0x4   :  { %2963 = sst [smem:[#allocation32_spill]] %s2931_s9 }
   0x5   :  { %2964 = sst [smem:[#allocation33_spill]] %s2932_s10 }
   0x6   :  { %2965 = sst [smem:[#allocation34_spill]] %s2933_s11 }
   0x7   :  { %16 = vsyncpa [#allocation4], 0 }
   0x8   :  { %18 = vsyncpa [#allocation4 + $0x1], 0 }
   0x9   :  { %19 = vsyncpa [#allocation7], 0 }
   0xa   :  { %21 = vsyncpa [#allocation7 + $0x1], 0 }
   0xb   :  { %22 = vsyncpa [#allocation10], 0 }
   0xc   :  { %23 = vsyncpa [#allocation13], 0 }
   0xd   :  { %24 = vsyncpa [#allocation5], 0 }
   0xe   :  { %26 = vsyncpa [#allocation5 + $0x1], 0  ;;  %s2450_s17 = smov 0   ;;  %s2452_s18 = smov 0  }
   0xf   :  { %s2454_s19 = smov 0   ;;  %s2456_s20 = smov 0  }
  0x10   :  { %s2458_s21 = smov 0   ;;  %s2460_s22 = smov 0  }
  0x11 LB: > { %2966 = sst [smem:[#allocation21_spill]] %s2349_s17  ;;  %s2481_s23 = sadd.s32 4294967295, %s2369_s22   ;;  %s2369_s22 = sphi %s2460_s22, %s32_s22   ;;  %s2365_s21 = sphi %s2458_s21, %s3013_s21   ;;  %s2361_s20 = sphi %s2456_s20, %s3012_s20   ;;  %s2357_s19 = sphi %s2454_s19, %s3016_s19   ;;  %s2353_s18 = sphi %s2452_s18, %s3015_s18   ;;  %s2349_s17 = sphi %s2450_s17, %s3014_s17  }
  0x12   : > { %2967 = sst [smem:[#allocation22_spill]] %s2361_s20  ;;  %p1744_p0 = scmp.ge.s32.totalorder %s2369_s22, 1 }
  0x13   : > { %2968 = sst [smem:[#allocation23_spill]] %s2365_s21  ;;  %p2944_p1 = scmp.eq.s32.totalorder %s2481_s23, 0 }
  0x14   : > { %2969 = sst [smem:[#allocation24_spill]] %s2369_s22  ;;  %p325_p2 = scmp.lt.s32.totalorder %s2369_s22, 3 }
  0x15   : > { %s2371_s25 = smov [#allocation9]   ;;  %s2372_s28 = smov [#allocation12]  }
  0x16   : > { %p2486_p3 = pnand %p1744_p0, %p325_p2  ;;  %s337_s26 = sshll.u32 %s2371_s25, 4  ;;  %s2490_s26 = int_to_ptr.vmem [resolvable:$true] %s337_s26 }
  0x17   : > { %s363_s29 = sshll.u32 %s2372_s28, 4  ;;  %s2972_s3 = sld [smem:[#allocation30_spill]]  ;;  %s2501_s29 = int_to_ptr.vmem [resolvable:$true] %s363_s29 }
  0x18   : > { %s2970_s24 = scalar_select %p2486_p3, 1, 0 }
  0x19   : > { %p1957_p4 = pneg %p2486_p3 }
  0x1b   : > { %p2497_p6 = pnand %p1957_p4, %p2944_p1 }
  0x1d   : > { %s2971_s27 = scalar_select %p2497_p6, 1, 0 }
  0x1e   : > { %s2073_s13 = scalar_lea.hbm %s2972_s3, 512  ;;  %p2511_p8 = pneg %p2497_p6 }
  0x1f   : > { %p2074_p7 = scmp.ne.s32.totalorder %s2972_s3, %s2073_s13  ;;  %p2080_p11 = scmp.lt.u32.totalorder %s2073_s13, %s2972_s3 }
  0x20   : > { %s2973_s16 = scalar_select %p2511_p8, 1, 0 }
  0x21   : > { %p2076_p9 = pnand %p2511_p8, %p2074_p7 }
  0x23   : > { %p2077_p10 = pneg %p2076_p9 }
  0x25   : > { %p2082_p12 = pnand %p2080_p11, %p2077_p10 }
  0x27   : > { %2085 = shalt.err (!%p2082_p12)
}
  0x28   : > { %s2086_s30 = scalar_lea.vmem %s2490_s26, 512  ;;  %p2094_p4 = scmp.lt.s32.totalorder %s2490_s26, %s2490_s26 }
  0x29   : > { %p2087_p13 = scmp.ne.s32.totalorder %s2490_s26, %s2086_s30  ;;  %p2095_p5 = scmp.lt.s32.totalorder %s2086_s30, %s2086_s30 }
  0x2b   : > { %p2089_p0 = pnand %p2087_p13, %p2511_p8  ;;  %p2096_p7 = por %p2095_p5, %p2094_p4 }
  0x2d   : > { %p2090_p2 = pneg %p2089_p0 }
  0x2f   : > { %p2097_p9 = pnand %p2096_p7, %p2090_p2 }
  0x31   : > { %2100 = shalt.err (!%p2097_p9)
}
  0x32   : > { %s2935_s12 = smov 128   ;;  %s2937_s13 = smov 8  }
  0x33   : > { %1960 = dma.hbm_to_vmem [thread:$0]  (!%p2497_p6), %s2972_s3, 512, %s2490_s26, [#allocation10], %s2935_s12, %s2935_s12, %s2937_s13  }
  0x34   : > { %s2974_s5 = sld [smem:[#allocation31_spill]] }
  0x3a   : > { %s2101_s30 = scalar_lea.hbm %s2974_s5, 512 }
  0x3b   : > { %p2102_p5 = scmp.ne.s32.totalorder %s2974_s5, %s2101_s30  ;;  %p2108_p12 = scmp.lt.u32.totalorder %s2101_s30, %s2974_s5 }
  0x3d   : > { %p2104_p10 = pnand %p2102_p5, %p2511_p8 }
  0x3f   : > { %p2105_p11 = pneg %p2104_p10 }
  0x41   : > { %p2110_p13 = pnand %p2108_p12, %p2105_p11 }
  0x43   : > { %2113 = shalt.err (!%p2110_p13)
}
  0x44   : > { %s2114_s26 = scalar_lea.vmem %s2501_s29, 512  ;;  %p2122_p7 = scmp.lt.s32.totalorder %s2501_s29, %s2501_s29 }
  0x45   : > { %p2115_p0 = scmp.ne.s32.totalorder %s2501_s29, %s2114_s26  ;;  %p2123_p9 = scmp.lt.s32.totalorder %s2114_s26, %s2114_s26 }
  0x47   : > { %p2117_p2 = pnand %p2115_p0, %p2511_p8  ;;  %p2124_p5 = por %p2123_p9, %p2122_p7 }
  0x49   : > { %p2118_p4 = pneg %p2117_p2 }
  0x4b   : > { %p2125_p10 = pnand %p2124_p5, %p2118_p4 }
  0x4d   : > { %2128 = shalt.err (!%p2125_p10)
}
  0x4e   : > { %1966 = dma.hbm_to_vmem [thread:$0]  (!%p2497_p6), %s2974_s5, 512, %s2501_s29, [#allocation13], %s2935_s12, %s2935_s12, %s2937_s13  }
  0x4f   : > { %s1743_s11 = sadd.s32 4294967294, %s2369_s22   ;;  %s44_s20 = sadd.s32 1, %s2365_s21 }
  0x50   : > { %p46_p11 = scmp.ge.s32.totalorder %s44_s20, 2  ;;  %s53_s14 = sadd.s32 1, %s2357_s19 }
  0x51   : > { %p60_p12 = scmp.ne.s32.totalorder %s2357_s19, %s2353_s18  ;;  %p61_p13 = scmp.eq.s32.totalorder %s2369_s22, 0 }
  0x52   : > { %s3018_s20 = smov (%p46_p11, %s44_s20), 0  ;;  %p66_p2 = scmp.ne.s32.totalorder %s2353_s18, %s2349_s17 }
  0x53   : > { %2975 = sst [smem:[#allocation25_spill]] %s3018_s20  ;;  %p2569_p0 = por %p61_p13, %p60_p12 }
  0x54   : > { %s48_s29 = ssub.s32 %s2365_s21, %s3018_s20  ;;  %p312_p4 = scmp.eq.s32.totalorder %s2481_s23, 1 }
  0x55   : > { %p51_p7 = scmp.eq.s32.totalorder %s48_s29, 0  ;;  %p2580_p9 = por %p2944_p1, %p66_p2 }
  0x56   : > { %p2584_p5 = por %p312_p4, %p60_p12  ;;  %p318_p10 = scmp.eq.s32.totalorder %s1743_s11, 1 }
  0x57   : > { %s2977_s25 = scalar_select %p2580_p9, 1, 0 }
  0x58   : > { %s2978_s28 = scalar_select %p2584_p5, 1, 0 }
  0x59   : > { %s2589_s30 = scalar_select %p51_p7, %s2357_s19, %s53_s14  }
  0x5a   : > { %2979 = sst [smem:[#allocation26_spill]] %s2978_s28  ;;  %p2591_p11 = por %p318_p10, %p66_p2 }
  0x5b   : > { %2980 = sst [smem:[#allocation27_spill]] %s2589_s30  ;;  %p1988_p13 = scmp.lt.s32.totalorder %s2369_s22, 2 }
  0x5c   : > { %s2981_s26 = scalar_select %p2591_p11, 1, 0 }
  0x5d   : > { %s2939_s9 = sand.u32 1, %s2357_s19   ;;  %s2598_s10 = sshll.u32 %s2365_s21, 7 }
  0x5e   : > { %2982 = sst [smem:[#allocation28_spill]] %s2981_s26  ;;  %s2602_s29 = sshll.u32 %s2939_s9, 3 }
  0x5f   : > { %p2606_p12 = pnand %p1988_p13, %p2569_p0  ;;  %s421_s11 = sand.u32 1, %s2369_s22  }
  0x60   : > { %s2984_s1 = sld [smem:[#allocation29_spill]]  ;;  %s425_s5 = scalar_lea.vmem [#allocation6], %s2602_s29 }
  0x61   : > { %s2983_s12 = scalar_select %p2606_p12, 1, 0 }
  0x62   : > { %s432_s9 = sshll.u32 %s425_s5, 4  ;;  %s2620_s15 = scalar_lea.sflag [#allocation7], %s421_s11  ;;  %s2618_s9 = int_to_ptr.vmem [resolvable:$true] %s432_s9 }
  0x63   : > { %p2626_p2 = pneg %p2606_p12 }
  0x65   : > { %s2985_s21 = scalar_select %p2626_p2, 1, 0 }
  0x66   : > { %s2615_s3 = scalar_lea.hbm %s2984_s1, %s2598_s10  ;;  %s2134_s30 = scalar_lea.hbm %s2984_s1, 256 }
  0x67   : > { %s2129_s20 = scalar_lea.hbm %s2615_s3, 128  ;;  %p2135_p10 = scmp.lt.u32.totalorder %s2615_s3, %s2984_s1 }
  0x68   : > { %p2130_p0 = scmp.ne.s32.totalorder %s2615_s3, %s2129_s20  ;;  %p2136_p13 = scmp.lt.u32.totalorder %s2134_s30, %s2129_s20 }
  0x69   : > { %p2138_p11 = scmp.lt.u32.totalorder %s2129_s20, %s2615_s3 }
  0x6a   : > { %p2132_p4 = pnand %p2626_p2, %p2130_p0  ;;  %p2137_p1 = por %p2136_p13, %p2135_p10 }
  0x6c   : > { %p2133_p7 = pneg %p2132_p4  ;;  %p2139_p5 = por %p2138_p11, %p2137_p1 }
  0x6e   : > { %p2140_p9 = pnand %p2139_p5, %p2133_p7 }
  0x70   : > { %2143 = shalt.err (!%p2140_p9)
}
  0x71   : > { %s2144_s11 = scalar_lea.vmem %s2618_s9, 128  ;;  %s2375_s13 = smov [#allocation6]  }
  0x72   : > { %p2145_p0 = scmp.ne.s32.totalorder %s2618_s9, %s2144_s11  ;;  %s2149_s14 = sshll.u32 %s2375_s13, 4  ;;  %s2150_s14 = int_to_ptr.vmem [resolvable:$false] %s2149_s14 }
  0x73   : > { %s2151_s22 = scalar_lea.vmem %s2150_s14, 256  ;;  %p2152_p6 = scmp.lt.s32.totalorder %s2618_s9, %s2150_s14 }
  0x74   : > { %p2147_p4 = pnand %p2145_p0, %p2626_p2  ;;  %p2153_p8 = scmp.lt.s32.totalorder %s2151_s22, %s2144_s11 }
  0x76   : > { %p2148_p3 = pneg %p2147_p4  ;;  %p2154_p10 = por %p2153_p8, %p2152_p6 }
  0x78   : > { %p2155_p13 = pnand %p2154_p10, %p2148_p3 }
  0x7a   : > { %2158 = shalt.err (!%p2155_p13)
}
  0x7b   : > { %1976 = dma.hbm_to_vmem [thread:$0]  (!%p2606_p12), %s2615_s3, 128, %s2618_s9, %s2620_s15  }
  0x7c   : > { %s2376_s20 = smov [#allocation11]   ;;  %s2377_s5 = smov [#allocation14]  }
  0x7d   : > { %s350_s30 = sshll.u32 %s2376_s20, 4  ;;  %s376_s1 = sshll.u32 %s2377_s5, 4  ;;  %s351_s30 = int_to_ptr.vmem [resolvable:$true] %s350_s30  ;;  %s377_s1 = int_to_ptr.vmem [resolvable:$true] %s376_s1 }
  0x7e   : > { %s2159_s14 = scalar_lea.hbm %s2926_s4, 512  ;;  %p2986_p3 = scmp.ne.s32.totalorder %s2973_s16, 0 }
  0x7f   : > { %p2160_p1 = scmp.ne.s32.totalorder %s2926_s4, %s2159_s14  ;;  %p2166_p9 = scmp.lt.u32.totalorder %s2159_s14, %s2926_s4 }
  0x81   : > { %p2162_p6 = pnand %p2160_p1, %p2986_p3 }
  0x83   : > { %p2163_p8 = pneg %p2162_p6 }
  0x85   : > { %p2168_p5 = pnand %p2166_p9, %p2163_p8 }
  0x87   : > { %2171 = shalt.err (!%p2168_p5)
}
  0x88   : > { %s2172_s3 = scalar_lea.vmem %s351_s30, 512  ;;  %p2180_p4 = scmp.lt.s32.totalorder %s351_s30, %s351_s30 }
  0x89   : > { %p2173_p11 = scmp.ne.s32.totalorder %s351_s30, %s2172_s3  ;;  %p2181_p10 = scmp.lt.s32.totalorder %s2172_s3, %s2172_s3 }
  0x8b   : > { %p2175_p7 = pnand %p2173_p11, %p2986_p3  ;;  %p2182_p13 = por %p2181_p10, %p2180_p4 }
  0x8d   : > { %p2176_p0 = pneg %p2175_p7 }
  0x8f   : > { %p2183_p12 = pnand %p2182_p13, %p2176_p0 }
  0x91   : > { %2186 = shalt.err (!%p2183_p12)
}
  0x92   : > { %p2987_p1 = scmp.ne.s32.totalorder %s2971_s27, 0  ;;  %s2988_s26 = smov 8  }
  0x93   : > { %s2989_s9 = smov 128   ;;  %s2187_s13 = scalar_lea.hbm %s2928_s6, 512 }
  0x94   : > { %1963 = dma.hbm_to_vmem [thread:$0]  (!%p2987_p1), %s2926_s4, 512, %s351_s30, [#allocation10], %s2989_s9, %s2989_s9, %s2988_s26  }
  0x95   : > { %p2188_p6 = scmp.ne.s32.totalorder %s2928_s6, %s2187_s13  ;;  %p2194_p9 = scmp.lt.u32.totalorder %s2187_s13, %s2928_s6 }
  0x97   : > { %p2190_p12 = pnand %p2188_p6, %p2986_p3 }
  0x99   : > { %p2191_p8 = pneg %p2190_p12 }
  0x9b   : > { %p2196_p5 = pnand %p2194_p9, %p2191_p8 }
  0x9d   : > { %2199 = shalt.err (!%p2196_p5)
}
  0x9e   : > { %s2200_s17 = scalar_lea.vmem %s377_s1, 512  ;;  %p2208_p4 = scmp.lt.s32.totalorder %s377_s1, %s377_s1 }
  0x9f   : > { %p2201_p11 = scmp.ne.s32.totalorder %s377_s1, %s2200_s17  ;;  %p2209_p10 = scmp.lt.s32.totalorder %s2200_s17, %s2200_s17 }
  0xa1   : > { %p2203_p7 = pnand %p2201_p11, %p2986_p3  ;;  %p2210_p13 = por %p2209_p10, %p2208_p4 }
  0xa3   : > { %p2204_p0 = pneg %p2203_p7 }
  0xa5   : > { %p2211_p2 = pnand %p2210_p13, %p2204_p0 }
  0xa7   : > { %2214 = shalt.err (!%p2211_p2)
}
  0xa8   : > { %1969 = dma.hbm_to_vmem [thread:$0]  (!%p2987_p1), %s2928_s6, 512, %s377_s1, [#allocation13], %s2989_s9, %s2989_s9, %s2988_s26  }
  0xa9   : > { %s2696_s5 = scalar_lea.hbm %s2922_s0, %s2598_s10  ;;  %s406_s27 = scalar_lea.vmem [#allocation3], %s2602_s29 }
  0xaa   : > { %s414_s13 = sshll.u32 %s406_s27, 4  ;;  %s2705_s22 = scalar_lea.hbm %s2924_s2, %s2598_s10  ;;  %s2699_s13 = int_to_ptr.vmem [resolvable:$true] %s414_s13 }
  0xab   : > { %s2990_s3 = sand.u32 1, %s2357_s19   ;;  %s2215_s26 = scalar_lea.hbm %s2696_s5, 128 }
  0xac   : > { %s403_s1 = scalar_lea.sflag [#allocation4], %s2990_s3  ;;  %p2216_p2 = scmp.ne.s32.totalorder %s2696_s5, %s2215_s26 }
  0xad   : > { %p2991_p3 = scmp.ne.s32.totalorder %s2985_s21, 0  ;;  %s2220_s30 = scalar_lea.hbm %s2922_s0, 256 }
  0xae   : > { %p2221_p12 = scmp.lt.u32.totalorder %s2696_s5, %s2922_s0  ;;  %p2222_p8 = scmp.lt.u32.totalorder %s2220_s30, %s2215_s26 }
  0xaf   : > { %p2218_p1 = pnand %p2216_p2, %p2991_p3  ;;  %p2224_p5 = scmp.lt.u32.totalorder %s2215_s26, %s2696_s5 }
  0xb0   : > { %p2223_p9 = por %p2222_p8, %p2221_p12 }
  0xb1   : > { %p2219_p6 = pneg %p2218_p1 }
  0xb2   : > { %p2225_p11 = por %p2224_p5, %p2223_p9 }
  0xb4   : > { %p2226_p7 = pnand %p2225_p11, %p2219_p6 }
  0xb6   : > { %2229 = shalt.err (!%p2226_p7)
}
  0xb7   : > { %s2230_s10 = scalar_lea.vmem %s2699_s13, 128  ;;  %s2378_s20 = smov [#allocation3]  }
  0xb8   : > { %p2231_p0 = scmp.ne.s32.totalorder %s2699_s13, %s2230_s10  ;;  %s2235_s27 = sshll.u32 %s2378_s20, 4  ;;  %s2236_s27 = int_to_ptr.vmem [resolvable:$false] %s2235_s27 }
  0xb9   : > { %s2237_s14 = scalar_lea.vmem %s2236_s27, 256  ;;  %p2238_p13 = scmp.lt.s32.totalorder %s2699_s13, %s2236_s27 }
  0xba   : > { %p2233_p4 = pnand %p2231_p0, %p2991_p3  ;;  %p2239_p2 = scmp.lt.s32.totalorder %s2237_s14, %s2230_s10 }
  0xbc   : > { %p2234_p10 = pneg %p2233_p4  ;;  %p2240_p1 = por %p2239_p2, %p2238_p13 }
  0xbe   : > { %p2241_p12 = pnand %p2240_p1, %p2234_p10 }
  0xc0   : > { %2244 = shalt.err (!%p2241_p12)
}
  0xc1   : > { %p2992_p6 = scmp.ne.s32.totalorder %s2983_s12, 0  ;;  %s443_s11 = scalar_lea.vmem [#allocation8], %s2602_s29 }
  0xc2   : > { %s450_s3 = sshll.u32 %s443_s11, 4  ;;  %s2245_s26 = scalar_lea.hbm %s2705_s22, 128  ;;  %s451_s3 = int_to_ptr.vmem [resolvable:$true] %s450_s3 }
  0xc3   : > { %1973 = dma.hbm_to_vmem [thread:$0]  (!%p2992_p6), %s2696_s5, 128, %s2699_s13, %s403_s1  }
  0xc4   : > { %p2246_p8 = scmp.ne.s32.totalorder %s2705_s22, %s2245_s26  ;;  %s2250_s30 = scalar_lea.hbm %s2924_s2, 256 }
  0xc5   : > { %p2251_p11 = scmp.lt.u32.totalorder %s2705_s22, %s2924_s2  ;;  %p2252_p7 = scmp.lt.u32.totalorder %s2250_s30, %s2245_s26 }
  0xc6   : > { %p2248_p9 = pnand %p2246_p8, %p2991_p3  ;;  %p2254_p4 = scmp.lt.u32.totalorder %s2245_s26, %s2705_s22 }
  0xc7   : > { %p2253_p0 = por %p2252_p7, %p2251_p11 }
  0xc8   : > { %p2249_p5 = pneg %p2248_p9 }
  0xc9   : > { %p2255_p10 = por %p2254_p4, %p2253_p0 }
  0xcb   : > { %p2256_p13 = pnand %p2255_p10, %p2249_p5 }
  0xcd   : > { %2259 = shalt.err (!%p2256_p13)
}
  0xce   : > { %s2260_s29 = scalar_lea.vmem %s451_s3, 128  ;;  %s2379_s5 = smov [#allocation8]  }
  0xcf   : > { %p2261_p2 = scmp.ne.s32.totalorder %s451_s3, %s2260_s29  ;;  %s2265_s13 = sshll.u32 %s2379_s5, 4  ;;  %s2266_s13 = int_to_ptr.vmem [resolvable:$false] %s2265_s13 }
  0xd0   : > { %s2267_s1 = scalar_lea.vmem %s2266_s13, 256  ;;  %p2268_p8 = scmp.lt.s32.totalorder %s451_s3, %s2266_s13 }
  0xd1   : > { %p2263_p1 = pnand %p2261_p2, %p2991_p3  ;;  %p2269_p9 = scmp.lt.s32.totalorder %s2267_s1, %s2260_s29 }
  0xd3   : > { %p2264_p12 = pneg %p2263_p1  ;;  %p2270_p6 = por %p2269_p9, %p2268_p8 }
  0xd5   : > { %p2271_p7 = pnand %p2270_p6, %p2264_p12 }
  0xd7   : > { %2274 = shalt.err (!%p2271_p7)
}
  0xd8   : > { %p2993_p11 = scmp.ne.s32.totalorder %s2983_s12, 0  ;;  %p2994_p5 = scmp.ne.s32.totalorder %s2970_s24, 0 }
  0xd9   : > { %s2752_s21 = sand.u32 (!%p2994_p5), 1, %s2353_s18   ;;  %p2995_p3 = scmp.ne.s32.totalorder (!%p2994_p5), %s2977_s25, 0 }
  0xda   : > { %1979 = dma.hbm_to_vmem [thread:$0]  (!%p2993_p11), %s2705_s22, 128, %s451_s3, %s2620_s15  }
  0xdb   : > { %459 = sbr.rel (%p2994_p5) target bundleno = 1525 (0x5f5), region = 64  ;;  %s2755_s10 = sshll.u32 (!%p2994_p5), %s2752_s21, 3 }
  0xdc   : > { %s462_s20 = scalar_lea.sflag (!%p2994_p5), [#allocation4], %s2752_s21  ;;  %s465_s27 = scalar_lea.vmem (!%p2994_p5), [#allocation3], %s2755_s10 }
  0xe2   : > { %2328 = dma.done.wait (%p2995_p3), %s462_s20, 128  }
  0xe3   : > { %2330 = vsyncadd (%p2995_p3), %s462_s20, 4294967168  ;;  %s470_s24 = sand.u32 1, %s2481_s23   ;;  %s474_s15 = scalar_lea.vmem [#allocation6], %s2755_s10 }
  0xe4   : > { %s471_s12 = scalar_lea.sflag [#allocation7], %s470_s24 }
  0xe5   : > { %2332 = dma.done.wait (%p2995_p3), %s471_s12, 256  }
  0xe6   : > { %2334 = vsyncadd (%p2995_p3), %s471_s12, 4294967040  ;;  %s483_s22 = scalar_lea.vmem [#allocation8], %s2755_s10  ;;  %p2996_p6 = scmp.eq.s32.totalorder %s2481_s23, 0 }
  0xe8   : > { %2336 = dma.done.wait (%p2996_p6), [#allocation10], 1024   ;;  %p2997_p0 = pmov %p2996_p6 }
  0xea   : > { %2338 = vsyncadd (%p2997_p0), [#allocation10], 4294966272  ;;  %p2998_p4 = pmov %p2997_p0 }
  0xeb   : > { %p2999_p10 = pmov %p2997_p0 }
  0xec   : > { %2340 = dma.done.wait (%p2998_p4), [#allocation13], 1024  }
  0xed   : > { %2342 = vsyncadd (%p2999_p10), [#allocation13], 4294966272  ;;  %v2380_v0 = vmov 0.0|0.0   ;;  %vm2381_vm0 = vmmov 0   ;;  %v2382_v1 = vmov 0.0   ;;  %v635_v2 = vld [vmem:[#allocation11] sm:$0xff] }
  0xee   : > { %1915 = vmatprep.subr.bf16.mxu1 %v2380_v0  ;;  %1909 = vmatprep.subr.bf16.mxu0 %v2380_v0  ;;  %v636_v3 = vld [vmem:[#allocation11 + $0x8] sm:$0xff]  ;;  %v549_v4 = vld [vmem:[#allocation9] sm:$0xff]  ;;  %v637_v7 = vld [vmem:[#allocation11 + $0x10] sm:$0xff]  ;;  %vm560_vm1 = vcmask 261120   ;;  %vm828_vm2 = vcmask 64512   ;;  %s2383_s3 = smov 112  }
  0xef   : > { %1844 = vmatprep.mubr.msk.f32.mxu1 %vm2381_vm0, %v2382_v1  ;;  %1833 = vmatprep.mubr.msk.f32.mxu0 %vm2381_vm0, %v2382_v1  ;;  %v1916_v5 = vpack.c.bf16 %v636_v3, %v635_v2  ;;  %v550_v6 = vld [vmem:[#allocation9 + $0x8] sm:$0xff]  ;;  %v638_v8 = vld [vmem:[#allocation11 + $0x18] sm:$0xff]  ;;  %v551_v10 = vld [vmem:[#allocation9 + $0x10] sm:$0xff]  ;;  %s2384_s26 = smov 120   ;;  %s2385_s9 = smov 104   ;;  %vm1466_vm3 = vcmask 130112  }
  0xf0   : > { %v1910_v9 = vpack.c.bf16 %v550_v6, %v549_v4  ;;  %v552_v11 = vld [vmem:[#allocation9 + $0x18] sm:$0xff]  ;;  %v1919_v12 = vpack.c.bf16 %v638_v8, %v637_v7  ;;  %v634_v14 = vld [vmem:[%s474_s15] sm:$0xff]  ;;  %v722_v18 = vld [vmem:[#allocation12 + $0x10] sm:$0xff]  ;;  %s3000_s28 = sld [smem:[#allocation32_spill]]  ;;  %s2386_s16 = smov 8   ;;  %vm1472_vm4 = vcmask 195712  }
  0xf1   : > { %1917 = vmatpush3.bf16.msra.mxu1 %v1916_v5  ;;  %v1913_v13 = vpack.c.bf16 %v552_v11, %v551_v10  ;;  %v548_v15 = vld [vmem:[%s465_s27] sm:$0xff]  ;;  %v720_v16 = vld [vmem:[#allocation12] sm:$0xff]  ;;  %v721_v17 = vld [vmem:[#allocation12 + $0x8] sm:$0xff]  ;;  %s2387_s29 = smov 16   ;;  %s3001_s5 = sld [smem:[#allocation22_spill]]  ;;  %vm1478_vm5 = vcmask 261312  }
  0xf2   : > { %1911 = vmatpush3.bf16.msra.mxu0 %v1910_v9  ;;  %1918 = vmatprep.subr.bf16.mxu1 %v2380_v0  ;;  %v1922_v19 = vpack.c.bf16 %v721_v17, %v720_v16  ;;  %v723_v20 = vld [vmem:[#allocation12 + $0x18] sm:$0xff]  ;;  %v1767_v23 = vld [vmem:[%s2930_s8] ss:$0 sm:$0xff]  ;;  %s2388_s13 = smov 24   ;;  %s3002_s1 = sld [smem:[#allocation26_spill]] }
  0xf3   : > { %1912 = vmatprep.subr.bf16.mxu0 %v2380_v0  ;;  %v1925_v21 = vpack.c.bf16 %v723_v20, %v722_v18  ;;  %v719_v22 = vld [vmem:[%s483_s22] sm:$0xff]  ;;  %v1765_v25 = vld [vmem:[%s2929_s7] ss:$0 sm:$0xff]  ;;  %s3003_s24 = sld [smem:[#allocation33_spill]]  ;;  %s547_s15 = scalar_lea.vmem [#allocation15], %s2755_s10 }
  0xf4   : > { %s1581_s22 = sshll.u32 %s547_s15, 4  ;;  %s3004_s14 = sld [smem:[#allocation34_spill]]  ;;  %s2874_s22 = int_to_ptr.vmem [resolvable:$true] %s1581_s22 }
  0xf5   : > { %1920 = vmatpush3.bf16.msra.mxu1 %v1919_v12  ;;  %s2389_s10 = smov [#allocation15]  }
  0xf6   : > { %1914 = vmatpush3.bf16.msra.mxu0 %v1913_v13  ;;  %1858 = vmatprep.subr.mxu1 %v2382_v1  ;;  %v1769_v31 = vld [vmem:[%s3000_s28] ss:$0 sm:$0xff] }
  0xf7   : > { %1921 = vmatprep.subr.bf16.mxu0 %v2380_v0  ;;  %s1786_s12 = sshll.u32 %s3001_s5, 7 }
  0xf8   : > { %1845 = vmatmul.mubr.msk.f32.vlgmr.msra.gmra.mrb[0].mxu1 %vm560_vm1, %v634_v14  ;;  %p3005_p2 = scmp.ne.s32.totalorder %s3002_s1, 0 }
  0xf9   : > { %1834 = vmatmul.mubr.msk.f32.vlgmr.msra.gmra.mrb[0].mxu0 %vm560_vm1, %v548_v15  ;;  %1860 = vmatprep.mubr.msk.f32.mxu1 %vm2381_vm0, %v2382_v1 }
  0xfa   : > { %1855 = vmatprep.mubr.msk.f32.mxu0 %vm2381_vm0, %v2382_v1  ;;  %1923 = vmatpush3.bf16.msra.mxu0 %v1922_v19  ;;  %s2872_s11 = scalar_lea.hbm %s3004_s14, %s1786_s12 }
  0xfb   : > { %1924 = vmatprep.subr.bf16.mxu0 %v2380_v0 }
  0xfe   : > { %1926 = vmatpush3.bf16.msra.mxu0 %v1925_v21 }
  0xff   : > { %1878 = vmatprep.subr.mxu0 %v2382_v1 }
 0x101   : > { %1856 = vmatmul.mubr.msk.f32.vlgmr.msra.gmra.mrb[2].mxu0 %vm560_vm1, %v719_v22  ;;  %v1482_v22 = vld [vmem:[#allocation14 + $0x8] sm:$0xff] }
 0x102   : > { %1880 = vmatprep.mubr.msk.f32.mxu0 %vm2381_vm0, %v2382_v1 }
 0x1cb   : > { %v715_v24 = vpop.f32.mrb[0].mxu1 }
 0x1cc   : > { %v716_v26 = vadd.f32 %v1767_v23, %v715_v24  ;;  %v1846_v27 = vpop.f32.mrb[1].mxu1  ;;  %v630_v28 = vpop.f32.mrb[0].mxu0  ;;  %v1483_v24 = vld [vmem:[#allocation14 + $0x10] sm:$0xff] }
 0x1cd   : > { %v1835_v29 = vpop.f32.mrb[1].mxu0  ;;  %v631_v30 = vadd.f32 %v1765_v25, %v630_v28  ;;  %v1484_v25 = vld [vmem:[#allocation14 + $0x18] sm:$0xff] }
 0x1ce   : > { %814 = vrot.lane.b32.xlu1 %v716_v26, %s2383_s3  ;;  %812 = vrot.lane.b32.xlu0 %v716_v26, %s2384_s26  ;;  %v1931_v28 = vpack.c.bf16 %v1484_v25, %v1483_v24 }
 0x1cf   : > { %1859 = vmatpush3.xpose.msk.msra.mxu1 %vm828_vm2, %v716_v26 }
 0x1d0   : > { %1863 = vmatprep.subr.mxu1 %v2382_v1 }
 0x1d2   : > { %1861 = vmatmul.mubr.msk.f32.vlgmr.msra.gmra.mrb[2].mxu1 %vm828_vm2, %v631_v30  ;;  %807 = vrot.lane.b32.xlu1 %v631_v30, %s2383_s3 }
 0x1d3   : > { %805 = vrot.lane.b32.xlu0 %v631_v30, %s2384_s26  ;;  %1865 = vmatprep.mubr.msk.f32.mxu1 %vm2381_vm0, %v2382_v1 }
 0x1d4   : > { %v800_v32 = vpop.f32.mrb[2].mxu0 }
 0x1d5   : > { %v801_v33 = vadd.f32 %v1769_v31, %v800_v32  ;;  %v1857_v34 = vpop.f32.mrb[3].mxu0 }
 0x1d6   : > { %809 = vrot.lane.b32.xlu1 %v631_v30, %s2385_s9 }
 0x1d7   : > { %816 = vrot.lane.b32.xlu0 %v716_v26, %s2385_s9  ;;  %1879 = vmatpush3.msra.mxu0 %v801_v33 }
 0x1d8   : > { %1888 = vmatprep.subr.mxu0 %v2382_v1 }
 0x1da   : > { %819 = vrot.lane.b32.xlu1 %v801_v33, %s2384_s26  ;;  %s2275_s26 = scalar_lea.vmem %s2874_s22, 128 }
 0x1db   : > { %p2276_p13 = scmp.ne.s32.totalorder %s2874_s22, %s2275_s26 }
 0x1dd   : > { %p2277_p1 = pnand %p2276_p13, %p3005_p2 }
 0x1df   : > { %p2278_p12 = pneg %p2277_p1 }
 0x240   : > { %v813_v35 = vpop.permute.xlu0 %812  ;;  %v815_v36 = vpop.permute.xlu1 %814 }
 0x241   : > { %1864 = vmatpush3.xpose.msk.msra.mxu1 %vm828_vm2, %v813_v35 }
 0x242   : > { %1868 = vmatprep.subr.mxu1 %v2382_v1 }
 0x244   : > { %v808_v38 = vpop.permute.xlu1 %807 }
 0x245   : > { %v806_v37 = vpop.permute.xlu0 %805 }
 0x246   : > { %1866 = vmatmul.mubr.msk.f32.vlgmr.msra.gmra.mrb[4].mxu1 %vm828_vm2, %v806_v37 }
 0x247   : > { %1869 = vmatpush3.xpose.msk.msra.mxu1 %vm828_vm2, %v815_v36  ;;  %1870 = vmatprep.mubr.msk.f32.mxu1 %vm2381_vm0, %v2382_v1 }
 0x248   : > { %1873 = vmatprep.subr.mxu1 %v2382_v1  ;;  %v810_v40 = vpop.permute.xlu1 %809 }
 0x249   : > { %v817_v39 = vpop.permute.xlu0 %816 }
 0x24a   : > { %1871 = vmatmul.mubr.msk.f32.vlgmr.msra.gmra.mrb[6].mxu1 %vm828_vm2, %v808_v38 }
 0x24b   : > { %1874 = vmatpush3.xpose.msk.msra.mxu1 %vm828_vm2, %v817_v39  ;;  %1875 = vmatprep.mubr.msk.f32.mxu1 %vm2381_vm0, %v2382_v1 }
 0x24c   : > { %1883 = vmatprep.subr.mxu1 %v2382_v1  ;;  %v820_v44 = vpop.permute.xlu1 %819 }
 0x24e   : > { %1876 = vmatmul.mubr.msk.f32.vlgmr.msra.gmra.mrb[8].mxu1 %vm828_vm2, %v810_v40 }
 0x24f   : > { %1885 = vmatprep.mubr.msk.f32.mxu1 %vm2381_vm0, %v2382_v1  ;;  %1884 = vmatpush3.msra.mxu1 %v820_v44 }
 0x250   : > { %1893 = vmatprep.subr.mxu1 %v2382_v1 }
 0x2a5   : > { %v899_v41 = vpop.f32.mrb[2].mxu1 }
 0x2a6   : > { %v1862_v42 = vpop.f32.mrb[3].mxu1  ;;  %v1125_v43 = vsel %vm828_vm2, %v899_v41, -inf }
 0x2a7   : > { %1126 = vmax.xlane.f32.xlu0 %v1125_v43  ;;  %v1783_v42 = vld [vmem:[%s3003_s24] ss:$0 sm:$0xff] }
 0x319   : > { %v973_v45 = vpop.f32.mrb[4].mxu1 }
 0x31a   : > { %v1867_v46 = vpop.f32.mrb[5].mxu1  ;;  %v1128_v47 = vsel %vm828_vm2, %v973_v45, -inf }
 0x31b   : > { %1129 = vmax.xlane.f32.xlu1 %v1128_v47 }
 0x31d   : > { %v1047_v48 = vpop.f32.mrb[6].mxu1 }
 0x31e   : > { %v1872_v49 = vpop.f32.mrb[7].mxu1  ;;  %v1131_v50 = vsel %vm828_vm2, %v1047_v48, -inf }
 0x31f   : > { %1132 = vmax.xlane.f32.xlu0 %v1131_v50 }
 0x321   : > { %v1121_v51 = vpop.f32.mrb[8].mxu1 }
 0x322   : > { %v1877_v52 = vpop.f32.mrb[9].mxu1  ;;  %v1134_v53 = vsel %vm828_vm2, %v1121_v51, -inf }
 0x323   : > { %1135 = vmax.xlane.f32.xlu0 %v1134_v53 }
 0x32c   : > { %825 = vrot.lane.b32.xlu1 %v801_v33, %s2385_s9  ;;  %s2279_s9 = sshll.u32 %s2389_s10, 4  ;;  %s2280_s9 = int_to_ptr.vmem [resolvable:$false] %s2279_s9 }
 0x32d   : > { %s2281_s17 = scalar_lea.vmem %s2280_s9, 256  ;;  %p2282_p8 = scmp.lt.s32.totalorder %s2874_s22, %s2280_s9 }
 0x32e   : > { %p2283_p9 = scmp.lt.s32.totalorder %s2281_s17, %s2275_s26 }
 0x330   : > { %p2284_p7 = por %p2283_p9, %p2282_p8 }
 0x332   : > { %p2285_p11 = pnand %p2284_p7, %p2278_p12 }
 0x334   : > { %v1127_v54 = vpop.xlane.xlu0 %1126 }
 0x335   : > { %v1137_v55 = vsub.f32 %v899_v41, %v1127_v54 }
 0x337   : > { %v1141_v56 = vmul.f32 1.442695, %v1137_v55 }
 0x339   : > { %2057 = vpow2.f32 %v1141_v56  ;;  %822 = vrot.lane.b32.xlu0 %v801_v33, %s2383_s3  ;;  %s1567_s3 = scalar_lea.sflag [#allocation5], %s2752_s21 }
 0x343   : > { %v2058_v57 = vpop.eup %2057 }
 0x344   : > { %1881 = vmatmul.mubr.msk.f32.vlgmr.msra.gmra.mrb[4].mxu0 %vm828_vm2, %v2058_v57  ;;  %v1149_v11 = vsel %vm828_vm2, %v2058_v57, 0.0 }
 0x345   : > { %1890 = vmatprep.mubr.msk.f32.mxu0 %vm2381_vm0, %v2382_v1 }
 0x3a8   : > { %v1130_v58 = vpop.xlane.xlu1 %1129 }
 0x3a9   : > { %v1138_v59 = vsub.f32 %v973_v45, %v1130_v58 }
 0x3ab   : > { %v1143_v60 = vmul.f32 1.442695, %v1138_v59 }
 0x3ac   : > { %v1133_v61 = vpop.xlane.xlu0 %1132  ;;  %v826_v7 = vpop.permute.xlu1 %825 }
 0x3ad   : > { %2059 = vpow2.f32 %v1143_v60  ;;  %v1139_v62 = vsub.f32 %v1047_v48, %v1133_v61 }
 0x3af   : > { %v1145_v63 = vmul.f32 1.442695, %v1139_v62 }
 0x3b0   : > { %v1136_v2 = vpop.xlane.xlu0 %1135 }
 0x3b1   : > { %2061 = vpow2.f32 %v1145_v63  ;;  %v1140_v3 = vsub.f32 %v1121_v51, %v1136_v2 }
 0x3b3   : > { %v1147_v4 = vmul.f32 1.442695, %v1140_v3 }
 0x3b4   : > { %v823_v5 = vpop.permute.xlu0 %822 }
 0x3b5   : > { %2063 = vpow2.f32 %v1147_v4  ;;  %1889 = vmatpush3.msra.mxu0 %v823_v5 }
 0x3b6   : > { %1927 = vmatprep.subr.bf16.mxu0 %v2380_v0 }
 0x3b7   : > { %v2060_v6 = vpop.eup %2059 }
 0x3b8   : > { %1886 = vmatmul.mubr.msk.f32.vlgmr.msra.gmra.mrb[10].mxu1 %vm828_vm2, %v2060_v6  ;;  %v1152_v8 = vsel %vm828_vm2, %v2060_v6, 0.0 }
 0x3b9   : > { %1894 = vmatpush3.msra.mxu1 %v826_v7  ;;  %1153 = vadd.xlane.f32.xlu1 %v1152_v8 }
 0x3ba   : > { %1895 = vmatprep.mubr.msk.f32.mxu1 %vm2381_vm0, %v2382_v1 }
 0x3bb   : > { %v2062_v9 = vpop.eup %2061 }
 0x3bc   : > { %1891 = vmatmul.mubr.msk.f32.vlgmr.msra.gmra.mrb[6].mxu0 %vm828_vm2, %v2062_v9  ;;  %v1155_v10 = vsel %vm828_vm2, %v2062_v9, 0.0 }
 0x3bd   : > { %1156 = vadd.xlane.f32.xlu0 %v1155_v10  ;;  %1150 = vadd.xlane.f32.xlu1 %v1149_v11 }
 0x3be   : > { %1906 = vmatprep.mubr.msk.f32.mxu0 %vm2381_vm0, %v2382_v1  ;;  %v1481_v1 = vld [vmem:[#allocation14] sm:$0xff] }
 0x3bf   : > { %v2064_v12 = vpop.eup %2063  ;;  %v1928_v23 = vpack.c.bf16 %v1482_v22, %v1481_v1 }
 0x3c0   : > { %1896 = vmatmul.mubr.msk.f32.vlgmr.msra.gmra.mrb[12].mxu1 %vm828_vm2, %v2064_v12  ;;  %v1158_v13 = vsel %vm828_vm2, %v2064_v12, 0.0 }
 0x3c1   : > { %1159 = vadd.xlane.f32.xlu0 %v1158_v13  ;;  %1929 = vmatpush3.bf16.msra.mxu0 %v1928_v23 }
 0x3c2   : > { %1930 = vmatprep.subr.bf16.mxu0 %v2380_v0 }
 0x3c5   : > { %1932 = vmatpush3.bf16.msra.mxu0 %v1931_v28 }
 0x417   : > { %v1230_v14 = vpop.f32.mrb[4].mxu0 }
 0x418   : > { %v1882_v15 = vpop.f32.mrb[5].mxu0 }
 0x446   : > { %v1154_v16 = vpop.xlane.xlu1 %1153 }
 0x44a   : > { %v1151_v17 = vpop.xlane.xlu1 %1150  ;;  %v1157_v20 = vpop.xlane.xlu0 %1156 }
 0x44b   : > { %2065 = vrcp.f32 %v1151_v17 }
 0x44c   : > { %2067 = vrcp.f32 %v1154_v16 }
 0x44d   : > { %2069 = vrcp.f32 %v1157_v20 }
 0x44e   : > { %v1160_v21 = vpop.xlane.xlu0 %1159 }
 0x44f   : > { %2071 = vrcp.f32 %v1160_v21 }
 0x455   : > { %v2066_v18 = vpop.eup %2065 }
 0x456   : > { %v1457_v19 = vmul.f32 %v2066_v18, %v1230_v14  ;;  %v2068_v26 = vpop.eup %2067 }
 0x457   : > { %v2070_v31 = vpop.eup %2069 }
 0x458   : > { %1461 = vst.msk [vmem:[#allocation2] sm:$0xff] %vm828_vm2, %v1457_v19 }
 0x459   : > { %v2072_v35 = vpop.eup %2071 }
 0x48b   : > { %v1303_v27 = vpop.f32.mrb[10].mxu1 }
 0x48c   : > { %v1458_v29 = vmul.f32 %v2068_v26, %v1303_v27  ;;  %v1887_v30 = vpop.f32.mrb[11].mxu1 }
 0x48e   : > { %1463 = vrot.lane.b32.xlu0 %v1458_v29, %s2386_s16 }
 0x48f   : > { %v1376_v32 = vpop.f32.mrb[6].mxu0 }
 0x490   : > { %v1459_v33 = vmul.f32 %v2070_v31, %v1376_v32  ;;  %v1892_v34 = vpop.f32.mrb[7].mxu0 }
 0x492   : > { %1469 = vrot.lane.b32.xlu1 %v1459_v33, %s2387_s29 }
 0x493   : > { %v1449_v36 = vpop.f32.mrb[12].mxu1 }
 0x494   : > { %v1460_v37 = vmul.f32 %v2072_v35, %v1449_v36  ;;  %v1897_v38 = vpop.f32.mrb[13].mxu1 }
 0x496   : > { %1475 = vrot.lane.b32.xlu1 %v1460_v37, %s2388_s13 }
 0x500   : > { %v1464_v39 = vpop.permute.xlu0 %1463 }
 0x501   : > { %1467 = vst.msk [vmem:[#allocation2] sm:$0xff] %vm1466_vm3, %v1464_v39 }
 0x504   : > { %v1470_v0 = vpop.permute.xlu1 %1469 }
 0x505   : > { %1473 = vst.msk [vmem:[#allocation2] sm:$0xff] %vm1472_vm4, %v1470_v0 }
 0x508   : > { %v1476_v40 = vpop.permute.xlu1 %1475 }
 0x509   : > { %1479 = vst.msk [vmem:[#allocation2] sm:$0xff] %vm1478_vm5, %v1476_v40 }
 0x510   : > { %v1480_v41 = vld [vmem:[#allocation2] sm:$0xff] }
 0x511   : > { %1907 = vmatmul.mubr.msk.f32.vlgmr.msra.gmra.mrb[8].mxu0 %vm560_vm1, %v1480_v41 }
 0x5e4   : > { %v1561_v43 = vpop.f32.mrb[8].mxu0 }
 0x5e5   : > { %v1562_v44 = vadd.f32 %v1783_v42, %v1561_v43  ;;  %v1908_v45 = vpop.f32.mrb[9].mxu0 }
 0x5e7   : > { %1565 = vst.msk [vmem:[%s547_s15] sm:$0xff] %vm560_vm1, %v1562_v44 }
 0x5e8   : > { %2288 = shalt.err (!%p2285_p11)
}
 0x5e9   : > { %s2289_s21 = scalar_lea.hbm %s2872_s11, 128  ;;  %s2293_s16 = scalar_lea.hbm %s3004_s14, 256 }
 0x5ea   : > { %p2290_p5 = scmp.ne.s32.totalorder %s2872_s11, %s2289_s21  ;;  %p2294_p0 = scmp.lt.u32.totalorder %s2872_s11, %s3004_s14 }
 0x5eb   : > { %p2295_p4 = scmp.lt.u32.totalorder %s2293_s16, %s2289_s21  ;;  %p2297_p13 = scmp.lt.u32.totalorder %s2289_s21, %s2872_s11 }
 0x5ec   : > { %p2291_p3 = pnand %p2290_p5, %p3005_p2 }
 0x5ed   : > { %p2296_p10 = por %p2295_p4, %p2294_p0 }
 0x5ee   : > { %p2292_p6 = pneg %p2291_p3 }
 0x5ef   : > { %p2298_p1 = por %p2297_p13, %p2296_p10 }
 0x5f1   : > { %p2299_p12 = pnand %p2298_p1, %p2292_p6 }
 0x5f3   : > { %2302 = shalt.err (!%p2299_p12)
}
 0x5f4   : > { %1955 = dma.vmem_to_hbm [thread:$0]  (%p3005_p2), %s2874_s22, 128, %s2872_s11, %s1567_s3  }
 0x5f5 PF: > { %s3006_s13 = sld [smem:[#allocation21_spill]]  ;;  %s3007_s20 = sld [smem:[#allocation28_spill]] }
 0x5f6   : > { %s3008_s27 = sld [smem:[#allocation24_spill]] }
 0x5fb   : > { %s1593_s24 = sand.u32 1, %s3006_s13   ;;  %p3009_p8 = scmp.ne.s32.totalorder %s3007_s20, 0 }
 0x5fc   : > { %p3010_p9 = scmp.ge.s32.totalorder %s3008_s27, 2  ;;  %s1594_s12 = scalar_lea.sflag [#allocation5], %s1593_s24 }
 0x5fe   : > { %p1981_p7 = pnand %p3010_p9, %p3009_p8 }
 0x600   : > { %2344 = dma.done.wait (!%p1981_p7), %s1594_s12, 128  }
 0x601   : > { %2346 = vsyncadd (!%p1981_p7), %s1594_s12, 4294967168  ;;  %s32_s22 = sadd.s32 1, %s3008_s27   ;;  %s3011_s1 = sld [smem:[#allocation27_spill]] }
 0x602   : > { %p29_p11 = scmp.ge.s32.totalorder %s32_s22, 4   ;;  %s3012_s20 = sld [smem:[#allocation23_spill]] }
 0x603   : > { %s3013_s21 = sld [smem:[#allocation25_spill]]  ;;  %s3014_s17 = smov %s2353_s18 }
 0x604   : > { %s3015_s18 = smov %s2357_s19  ;;  %31 = sbr.rel (!%p29_p11) target bundleno = 17 (0x11), region = 149 }
 0x607   : > { %s3016_s19 = smov %s3011_s1 }
 0x60b   :  { %1599 = vsyncpa [#allocation4], 1 }
 0x60c   :  { %1601 = vsyncpa [#allocation4 + $0x1], 1 }
 0x60d   :  { %1602 = vsyncpa [#allocation7], 1 }
 0x60e   :  { %1604 = vsyncpa [#allocation7 + $0x1], 1 }
 0x60f   :  { %1605 = vsyncpa [#allocation10], 1 }
 0x610   :  { %1606 = vsyncpa [#allocation13], 1 }
 0x611   :  { %1607 = vsyncpa [#allocation5], 1 }
 0x612   :  { %1609 = vsyncpa [#allocation5 + $0x1], 1 }

// kernel: tpu_custom_call.1
= control target key start
LH: loop header
LB: loop body
LE: loop exit
PB: predicated region body
PF: predicated region fallthrough
CT: control target
= control target key end

     0   :  { %s2922_s0 = inlined_call_operand.hbm [shape: f32[2,8,32], index: 0, kind: input, shape index: {}]   ;;  %s2923_s1 = inlined_call_operand.hbm [shape: f32[2,8,32], index: 1, kind: input, shape index: {}]   ;;  %s2924_s2 = inlined_call_operand.hbm [shape: f32[2,8,32], index: 2, kind: input, shape index: {}]   ;;  %s2925_s3 = inlined_call_operand.hbm [shape: f32[32,32], index: 3, kind: input, shape index: {}]   ;;  %s2926_s4 = inlined_call_operand.hbm [shape: f32[32,32], index: 4, kind: input, shape index: {}]   ;;  %s2927_s5 = inlined_call_operand.hbm [shape: f32[32,32], index: 5, kind: input, shape index: {}]   ;;  %s2928_s6 = inlined_call_operand.hbm [shape: f32[32,32], index: 6, kind: input, shape index: {}]   ;;  %s2929_s7 = inlined_call_operand.vmem [shape: f32[1,32], index: 7, kind: input, shape index: {}]   ;;  %s2930_s8 = inlined_call_operand.vmem [shape: f32[1,32], index: 8, kind: input, shape index: {}]   ;;  %s2931_s9 = inlined_call_operand.vmem [shape: f32[1,32], index: 9, kind: input, shape index: {}]   ;;  %s2932_s10 = inlined_call_operand.vmem [shape: f32[1,32], index: 10, kind: input, shape index: {}]   ;;  %s2933_s11 = inlined_call_operand.hbm [shape: f32[2,8,32], index: 11, kind: output, shape index: {}]  }
   0x1   :  { %2960 = sst [smem:[#allocation29_spill]] %s2923_s1 }
   0x2   :  { %2961 = sst [smem:[#allocation30_spill]] %s2925_s3 }
   0x3   :  { %2962 = sst [smem:[#allocation31_spill]] %s2927_s5 }
   0x4   :  { %2963 = sst [smem:[#allocation32_spill]] %s2931_s9 }
   0x5   :  { %2964 = sst [smem:[#allocation33_spill]] %s2932_s10 }
   0x6   :  { %2965 = sst [smem:[#allocation34_spill]] %s2933_s11 }
   0x7   :  { %16 = vsyncpa [#allocation4], 0 }
   0x8   :  { %18 = vsyncpa [#allocation4 + $0x1], 0 }
   0x9   :  { %19 = vsyncpa [#allocation7], 0 }
   0xa   :  { %21 = vsyncpa [#allocation7 + $0x1], 0 }
   0xb   :  { %22 = vsyncpa [#allocation10], 0 }
   0xc   :  { %23 = vsyncpa [#allocation13], 0 }
   0xd   :  { %24 = vsyncpa [#allocation5], 0 }
   0xe   :  { %26 = vsyncpa [#allocation5 + $0x1], 0  ;;  %s2450_s17 = smov 0   ;;  %s2452_s18 = smov 0  }
   0xf   :  { %s2454_s19 = smov 0   ;;  %s2456_s20 = smov 0  }
  0x10   :  { %s2458_s21 = smov 0   ;;  %s2460_s22 = smov 0  }
  0x11 LB: > { %2966 = sst [smem:[#allocation21_spill]] %s2349_s17  ;;  %s2481_s23 = sadd.s32 4294967295, %s2369_s22   ;;  %s2369_s22 = sphi %s2460_s22, %s32_s22   ;;  %s2365_s21 = sphi %s2458_s21, %s3013_s21   ;;  %s2361_s20 = sphi %s2456_s20, %s3012_s20   ;;  %s2357_s19 = sphi %s2454_s19, %s3016_s19   ;;  %s2353_s18 = sphi %s2452_s18, %s3015_s18   ;;  %s2349_s17 = sphi %s2450_s17, %s3014_s17  }
  0x12   : > { %2967 = sst [smem:[#allocation22_spill]] %s2361_s20  ;;  %p1744_p0 = scmp.ge.s32.totalorder %s2369_s22, 1 }
  0x13   : > { %2968 = sst [smem:[#allocation23_spill]] %s2365_s21  ;;  %p2944_p1 = scmp.eq.s32.totalorder %s2481_s23, 0 }
  0x14   : > { %2969 = sst [smem:[#allocation24_spill]] %s2369_s22  ;;  %p325_p2 = scmp.lt.s32.totalorder %s2369_s22, 3 }
  0x15   : > { %s2371_s25 = smov [#allocation9]   ;;  %s2372_s28 = smov [#allocation12]  }
  0x16   : > { %p2486_p3 = pnand %p1744_p0, %p325_p2  ;;  %s337_s26 = sshll.u32 %s2371_s25, 4  ;;  %s2490_s26 = int_to_ptr.vmem [resolvable:$true] %s337_s26 }
  0x17   : > { %s363_s29 = sshll.u32 %s2372_s28, 4  ;;  %s2972_s3 = sld [smem:[#allocation30_spill]]  ;;  %s2501_s29 = int_to_ptr.vmem [resolvable:$true] %s363_s29 }
  0x18   : > { %s2970_s24 = scalar_select %p2486_p3, 1, 0 }
  0x19   : > { %p1957_p4 = pneg %p2486_p3 }
  0x1b   : > { %p2497_p6 = pnand %p1957_p4, %p2944_p1 }
  0x1d   : > { %s2971_s27 = scalar_select %p2497_p6, 1, 0 }
  0x1e   : > { %s2073_s13 = scalar_lea.hbm %s2972_s3, 512  ;;  %p2511_p8 = pneg %p2497_p6 }
  0x1f   : > { %p2074_p7 = scmp.ne.s32.totalorder %s2972_s3, %s2073_s13  ;;  %p2080_p11 = scmp.lt.u32.totalorder %s2073_s13, %s2972_s3 }
  0x20   : > { %s2973_s16 = scalar_select %p2511_p8, 1, 0 }
  0x21   : > { %p2076_p9 = pnand %p2511_p8, %p2074_p7 }
  0x23   : > { %p2077_p10 = pneg %p2076_p9 }
  0x25   : > { %p2082_p12 = pnand %p2080_p11, %p2077_p10 }
  0x27   : > { %2085 = shalt.err (!%p2082_p12)
}
  0x28   : > { %s2086_s30 = scalar_lea.vmem %s2490_s26, 512  ;;  %p2094_p4 = scmp.lt.s32.totalorder %s2490_s26, %s2490_s26 }
  0x29   : > { %p2087_p13 = scmp.ne.s32.totalorder %s2490_s26, %s2086_s30  ;;  %p2095_p5 = scmp.lt.s32.totalorder %s2086_s30, %s2086_s30 }
  0x2b   : > { %p2089_p0 = pnand %p2087_p13, %p2511_p8  ;;  %p2096_p7 = por %p2095_p5, %p2094_p4 }
  0x2d   : > { %p2090_p2 = pneg %p2089_p0 }
  0x2f   : > { %p2097_p9 = pnand %p2096_p7, %p2090_p2 }
  0x31   : > { %2100 = shalt.err (!%p2097_p9)
}
  0x32   : > { %s2935_s12 = smov 128   ;;  %s2937_s13 = smov 8  }
  0x33   : > { %1960 = dma.hbm_to_vmem [thread:$0]  (!%p2497_p6), %s2972_s3, 512, %s2490_s26, [#allocation10], %s2935_s12, %s2935_s12, %s2937_s13  }
  0x34   : > { %s2974_s5 = sld [smem:[#allocation31_spill]] }
  0x3a   : > { %s2101_s30 = scalar_lea.hbm %s2974_s5, 512 }
  0x3b   : > { %p2102_p5 = scmp.ne.s32.totalorder %s2974_s5, %s2101_s30  ;;  %p2108_p12 = scmp.lt.u32.totalorder %s2101_s30, %s2974_s5 }
  0x3d   : > { %p2104_p10 = pnand %p2102_p5, %p2511_p8 }
  0x3f   : > { %p2105_p11 = pneg %p2104_p10 }
  0x41   : > { %p2110_p13 = pnand %p2108_p12, %p2105_p11 }
  0x43   : > { %2113 = shalt.err (!%p2110_p13)
}
  0x44   : > { %s2114_s26 = scalar_lea.vmem %s2501_s29, 512  ;;  %p2122_p7 = scmp.lt.s32.totalorder %s2501_s29, %s2501_s29 }
  0x45   : > { %p2115_p0 = scmp.ne.s32.totalorder %s2501_s29, %s2114_s26  ;;  %p2123_p9 = scmp.lt.s32.totalorder %s2114_s26, %s2114_s26 }
  0x47   : > { %p2117_p2 = pnand %p2115_p0, %p2511_p8  ;;  %p2124_p5 = por %p2123_p9, %p2122_p7 }
  0x49   : > { %p2118_p4 = pneg %p2117_p2 }
  0x4b   : > { %p2125_p10 = pnand %p2124_p5, %p2118_p4 }
  0x4d   : > { %2128 = shalt.err (!%p2125_p10)
}
  0x4e   : > { %1966 = dma.hbm_to_vmem [thread:$0]  (!%p2497_p6), %s2974_s5, 512, %s2501_s29, [#allocation13], %s2935_s12, %s2935_s12, %s2937_s13  }
  0x4f   : > { %s1743_s11 = sadd.s32 4294967294, %s2369_s22   ;;  %s44_s20 = sadd.s32 1, %s2365_s21 }
  0x50   : > { %p46_p11 = scmp.ge.s32.totalorder %s44_s20, 2  ;;  %s53_s14 = sadd.s32 1, %s2357_s19 }
  0x51   : > { %p60_p12 = scmp.ne.s32.totalorder %s2357_s19, %s2353_s18  ;;  %p61_p13 = scmp.eq.s32.totalorder %s2369_s22, 0 }
  0x52   : > { %s3018_s20 = smov (%p46_p11, %s44_s20), 0  ;;  %p66_p2 = scmp.ne.s32.totalorder %s2353_s18, %s2349_s17 }
  0x53   : > { %2975 = sst [smem:[#allocation25_spill]] %s3018_s20  ;;  %p2569_p0 = por %p61_p13, %p60_p12 }
  0x54   : > { %s48_s29 = ssub.s32 %s2365_s21, %s3018_s20  ;;  %p312_p4 = scmp.eq.s32.totalorder %s2481_s23, 1 }
  0x55   : > { %p51_p7 = scmp.eq.s32.totalorder %s48_s29, 0  ;;  %p2580_p9 = por %p2944_p1, %p66_p2 }
  0x56   : > { %p2584_p5 = por %p312_p4, %p60_p12  ;;  %p318_p10 = scmp.eq.s32.totalorder %s1743_s11, 1 }
  0x57   : > { %s2977_s25 = scalar_select %p2580_p9, 1, 0 }
  0x58   : > { %s2978_s28 = scalar_select %p2584_p5, 1, 0 }
  0x59   : > { %s2589_s30 = scalar_select %p51_p7, %s2357_s19, %s53_s14  }
  0x5a   : > { %2979 = sst [smem:[#allocation26_spill]] %s2978_s28  ;;  %p2591_p11 = por %p318_p10, %p66_p2 }
  0x5b   : > { %2980 = sst [smem:[#allocation27_spill]] %s2589_s30  ;;  %p1988_p13 = scmp.lt.s32.totalorder %s2369_s22, 2 }
  0x5c   : > { %s2981_s26 = scalar_select %p2591_p11, 1, 0 }
  0x5d   : > { %s2939_s9 = sand.u32 1, %s2357_s19   ;;  %s2598_s10 = sshll.u32 %s2365_s21, 7 }
  0x5e   : > { %2982 = sst [smem:[#allocation28_spill]] %s2981_s26  ;;  %s2602_s29 = sshll.u32 %s2939_s9, 3 }
  0x5f   : > { %p2606_p12 = pnand %p1988_p13, %p2569_p0  ;;  %s421_s11 = sand.u32 1, %s2369_s22  }
  0x60   : > { %s2984_s1 = sld [smem:[#allocation29_spill]]  ;;  %s425_s5 = scalar_lea.vmem [#allocation6], %s2602_s29 }
  0x61   : > { %s2983_s12 = scalar_select %p2606_p12, 1, 0 }
  0x62   : > { %s432_s9 = sshll.u32 %s425_s5, 4  ;;  %s2620_s15 = scalar_lea.sflag [#allocation7], %s421_s11  ;;  %s2618_s9 = int_to_ptr.vmem [resolvable:$true] %s432_s9 }
  0x63   : > { %p2626_p2 = pneg %p2606_p12 }
  0x65   : > { %s2985_s21 = scalar_select %p2626_p2, 1, 0 }
  0x66   : > { %s2615_s3 = scalar_lea.hbm %s2984_s1, %s2598_s10  ;;  %s2134_s30 = scalar_lea.hbm %s2984_s1, 256 }
  0x67   : > { %s2129_s20 = scalar_lea.hbm %s2615_s3, 128  ;;  %p2135_p10 = scmp.lt.u32.totalorder %s2615_s3, %s2984_s1 }
  0x68   : > { %p2130_p0 = scmp.ne.s32.totalorder %s2615_s3, %s2129_s20  ;;  %p2136_p13 = scmp.lt.u32.totalorder %s2134_s30, %s2129_s20 }
  0x69   : > { %p2138_p11 = scmp.lt.u32.totalorder %s2129_s20, %s2615_s3 }
  0x6a   : > { %p2132_p4 = pnand %p2626_p2, %p2130_p0  ;;  %p2137_p1 = por %p2136_p13, %p2135_p10 }
  0x6c   : > { %p2133_p7 = pneg %p2132_p4  ;;  %p2139_p5 = por %p2138_p11, %p2137_p1 }
  0x6e   : > { %p2140_p9 = pnand %p2139_p5, %p2133_p7 }
  0x70   : > { %2143 = shalt.err (!%p2140_p9)
}
  0x71   : > { %s2144_s11 = scalar_lea.vmem %s2618_s9, 128  ;;  %s2375_s13 = smov [#allocation6]  }
  0x72   : > { %p2145_p0 = scmp.ne.s32.totalorder %s2618_s9, %s2144_s11  ;;  %s2149_s14 = sshll.u32 %s2375_s13, 4  ;;  %s2150_s14 = int_to_ptr.vmem [resolvable:$false] %s2149_s14 }
  0x73   : > { %s2151_s22 = scalar_lea.vmem %s2150_s14, 256  ;;  %p2152_p6 = scmp.lt.s32.totalorder %s2618_s9, %s2150_s14 }
  0x74   : > { %p2147_p4 = pnand %p2145_p0, %p2626_p2  ;;  %p2153_p8 = scmp.lt.s32.totalorder %s2151_s22, %s2144_s11 }
  0x76   : > { %p2148_p3 = pneg %p2147_p4  ;;  %p2154_p10 = por %p2153_p8, %p2152_p6 }
  0x78   : > { %p2155_p13 = pnand %p2154_p10, %p2148_p3 }
  0x7a   : > { %2158 = shalt.err (!%p2155_p13)
}
  0x7b   : > { %1976 = dma.hbm_to_vmem [thread:$0]  (!%p2606_p12), %s2615_s3, 128, %s2618_s9, %s2620_s15  }
  0x7c   : > { %s2376_s20 = smov [#allocation11]   ;;  %s2377_s5 = smov [#allocation14]  }
  0x7d   : > { %s350_s30 = sshll.u32 %s2376_s20, 4  ;;  %s376_s1 = sshll.u32 %s2377_s5, 4  ;;  %s351_s30 = int_to_ptr.vmem [resolvable:$true] %s350_s30  ;;  %s377_s1 = int_to_ptr.vmem [resolvable:$true] %s376_s1 }
  0x7e   : > { %s2159_s14 = scalar_lea.hbm %s2926_s4, 512  ;;  %p2986_p3 = scmp.ne.s32.totalorder %s2973_s16, 0 }
  0x7f   : > { %p2160_p1 = scmp.ne.s32.totalorder %s2926_s4, %s2159_s14  ;;  %p2166_p9 = scmp.lt.u32.totalorder %s2159_s14, %s2926_s4 }
  0x81   : > { %p2162_p6 = pnand %p2160_p1, %p2986_p3 }
  0x83   : > { %p2163_p8 = pneg %p2162_p6 }
  0x85   : > { %p2168_p5 = pnand %p2166_p9, %p2163_p8 }
  0x87   : > { %2171 = shalt.err (!%p2168_p5)
}
  0x88   : > { %s2172_s3 = scalar_lea.vmem %s351_s30, 512  ;;  %p2180_p4 = scmp.lt.s32.totalorder %s351_s30, %s351_s30 }
  0x89   : > { %p2173_p11 = scmp.ne.s32.totalorder %s351_s30, %s2172_s3  ;;  %p2181_p10 = scmp.lt.s32.totalorder %s2172_s3, %s2172_s3 }
  0x8b   : > { %p2175_p7 = pnand %p2173_p11, %p2986_p3  ;;  %p2182_p13 = por %p2181_p10, %p2180_p4 }
  0x8d   : > { %p2176_p0 = pneg %p2175_p7 }
  0x8f   : > { %p2183_p12 = pnand %p2182_p13, %p2176_p0 }
  0x91   : > { %2186 = shalt.err (!%p2183_p12)
}
  0x92   : > { %p2987_p1 = scmp.ne.s32.totalorder %s2971_s27, 0  ;;  %s2988_s26 = smov 8  }
  0x93   : > { %s2989_s9 = smov 128   ;;  %s2187_s13 = scalar_lea.hbm %s2928_s6, 512 }
  0x94   : > { %1963 = dma.hbm_to_vmem [thread:$0]  (!%p2987_p1), %s2926_s4, 512, %s351_s30, [#allocation10], %s2989_s9, %s2989_s9, %s2988_s26  }
  0x95   : > { %p2188_p6 = scmp.ne.s32.totalorder %s2928_s6, %s2187_s13  ;;  %p2194_p9 = scmp.lt.u32.totalorder %s2187_s13, %s2928_s6 }
  0x97   : > { %p2190_p12 = pnand %p2188_p6, %p2986_p3 }
  0x99   : > { %p2191_p8 = pneg %p2190_p12 }
  0x9b   : > { %p2196_p5 = pnand %p2194_p9, %p2191_p8 }
  0x9d   : > { %2199 = shalt.err (!%p2196_p5)
}
  0x9e   : > { %s2200_s17 = scalar_lea.vmem %s377_s1, 512  ;;  %p2208_p4 = scmp.lt.s32.totalorder %s377_s1, %s377_s1 }
  0x9f   : > { %p2201_p11 = scmp.ne.s32.totalorder %s377_s1, %s2200_s17  ;;  %p2209_p10 = scmp.lt.s32.totalorder %s2200_s17, %s2200_s17 }
  0xa1   : > { %p2203_p7 = pnand %p2201_p11, %p2986_p3  ;;  %p2210_p13 = por %p2209_p10, %p2208_p4 }
  0xa3   : > { %p2204_p0 = pneg %p2203_p7 }
  0xa5   : > { %p2211_p2 = pnand %p2210_p13, %p2204_p0 }
  0xa7   : > { %2214 = shalt.err (!%p2211_p2)
}
  0xa8   : > { %1969 = dma.hbm_to_vmem [thread:$0]  (!%p2987_p1), %s2928_s6, 512, %s377_s1, [#allocation13], %s2989_s9, %s2989_s9, %s2988_s26  }
  0xa9   : > { %s2696_s5 = scalar_lea.hbm %s2922_s0, %s2598_s10  ;;  %s406_s27 = scalar_lea.vmem [#allocation3], %s2602_s29 }
  0xaa   : > { %s414_s13 = sshll.u32 %s406_s27, 4  ;;  %s2705_s22 = scalar_lea.hbm %s2924_s2, %s2598_s10  ;;  %s2699_s13 = int_to_ptr.vmem [resolvable:$true] %s414_s13 }
  0xab   : > { %s2990_s3 = sand.u32 1, %s2357_s19   ;;  %s2215_s26 = scalar_lea.hbm %s2696_s5, 128 }
  0xac   : > { %s403_s1 = scalar_lea.sflag [#allocation4], %s2990_s3  ;;  %p2216_p2 = scmp.ne.s32.totalorder %s2696_s5, %s2215_s26 }
  0xad   : > { %p2991_p3 = scmp.ne.s32.totalorder %s2985_s21, 0  ;;  %s2220_s30 = scalar_lea.hbm %s2922_s0, 256 }
  0xae   : > { %p2221_p12 = scmp.lt.u32.totalorder %s2696_s5, %s2922_s0  ;;  %p2222_p8 = scmp.lt.u32.totalorder %s2220_s30, %s2215_s26 }
  0xaf   : > { %p2218_p1 = pnand %p2216_p2, %p2991_p3  ;;  %p2224_p5 = scmp.lt.u32.totalorder %s2215_s26, %s2696_s5 }
  0xb0   : > { %p2223_p9 = por %p2222_p8, %p2221_p12 }
  0xb1   : > { %p2219_p6 = pneg %p2218_p1 }
  0xb2   : > { %p2225_p11 = por %p2224_p5, %p2223_p9 }
  0xb4   : > { %p2226_p7 = pnand %p2225_p11, %p2219_p6 }
  0xb6   : > { %2229 = shalt.err (!%p2226_p7)
}
  0xb7   : > { %s2230_s10 = scalar_lea.vmem %s2699_s13, 128  ;;  %s2378_s20 = smov [#allocation3]  }
  0xb8   : > { %p2231_p0 = scmp.ne.s32.totalorder %s2699_s13, %s2230_s10  ;;  %s2235_s27 = sshll.u32 %s2378_s20, 4  ;;  %s2236_s27 = int_to_ptr.vmem [resolvable:$false] %s2235_s27 }
  0xb9   : > { %s2237_s14 = scalar_lea.vmem %s2236_s27, 256  ;;  %p2238_p13 = scmp.lt.s32.totalorder %s2699_s13, %s2236_s27 }
  0xba   : > { %p2233_p4 = pnand %p2231_p0, %p2991_p3  ;;  %p2239_p2 = scmp.lt.s32.totalorder %s2237_s14, %s2230_s10 }
  0xbc   : > { %p2234_p10 = pneg %p2233_p4  ;;  %p2240_p1 = por %p2239_p2, %p2238_p13 }
  0xbe   : > { %p2241_p12 = pnand %p2240_p1, %p2234_p10 }
  0xc0   : > { %2244 = shalt.err (!%p2241_p12)
}
  0xc1   : > { %p2992_p6 = scmp.ne.s32.totalorder %s2983_s12, 0  ;;  %s443_s11 = scalar_lea.vmem [#allocation8], %s2602_s29 }
  0xc2   : > { %s450_s3 = sshll.u32 %s443_s11, 4  ;;  %s2245_s26 = scalar_lea.hbm %s2705_s22, 128  ;;  %s451_s3 = int_to_ptr.vmem [resolvable:$true] %s450_s3 }
  0xc3   : > { %1973 = dma.hbm_to_vmem [thread:$0]  (!%p2992_p6), %s2696_s5, 128, %s2699_s13, %s403_s1  }
  0xc4   : > { %p2246_p8 = scmp.ne.s32.totalorder %s2705_s22, %s2245_s26  ;;  %s2250_s30 = scalar_lea.hbm %s2924_s2, 256 }
  0xc5   : > { %p2251_p11 = scmp.lt.u32.totalorder %s2705_s22, %s2924_s2  ;;  %p2252_p7 = scmp.lt.u32.totalorder %s2250_s30, %s2245_s26 }
  0xc6   : > { %p2248_p9 = pnand %p2246_p8, %p2991_p3  ;;  %p2254_p4 = scmp.lt.u32.totalorder %s2245_s26, %s2705_s22 }
  0xc7   : > { %p2253_p0 = por %p2252_p7, %p2251_p11 }
  0xc8   : > { %p2249_p5 = pneg %p2248_p9 }
  0xc9   : > { %p2255_p10 = por %p2254_p4, %p2253_p0 }
  0xcb   : > { %p2256_p13 = pnand %p2255_p10, %p2249_p5 }
  0xcd   : > { %2259 = shalt.err (!%p2256_p13)
}
  0xce   : > { %s2260_s29 = scalar_lea.vmem %s451_s3, 128  ;;  %s2379_s5 = smov [#allocation8]  }
  0xcf   : > { %p2261_p2 = scmp.ne.s32.totalorder %s451_s3, %s2260_s29  ;;  %s2265_s13 = sshll.u32 %s2379_s5, 4  ;;  %s2266_s13 = int_to_ptr.vmem [resolvable:$false] %s2265_s13 }
  0xd0   : > { %s2267_s1 = scalar_lea.vmem %s2266_s13, 256  ;;  %p2268_p8 = scmp.lt.s32.totalorder %s451_s3, %s2266_s13 }
  0xd1   : > { %p2263_p1 = pnand %p2261_p2, %p2991_p3  ;;  %p2269_p9 = scmp.lt.s32.totalorder %s2267_s1, %s2260_s29 }
  0xd3   : > { %p2264_p12 = pneg %p2263_p1  ;;  %p2270_p6 = por %p2269_p9, %p2268_p8 }
  0xd5   : > { %p2271_p7 = pnand %p2270_p6, %p2264_p12 }
  0xd7   : > { %2274 = shalt.err (!%p2271_p7)
}
  0xd8   : > { %p2993_p11 = scmp.ne.s32.totalorder %s2983_s12, 0  ;;  %p2994_p5 = scmp.ne.s32.totalorder %s2970_s24, 0 }
  0xd9   : > { %s2752_s21 = sand.u32 (!%p2994_p5), 1, %s2353_s18   ;;  %p2995_p3 = scmp.ne.s32.totalorder (!%p2994_p5), %s2977_s25, 0 }
  0xda   : > { %1979 = dma.hbm_to_vmem [thread:$0]  (!%p2993_p11), %s2705_s22, 128, %s451_s3, %s2620_s15  }
  0xdb   : > { %459 = sbr.rel (%p2994_p5) target bundleno = 1525 (0x5f5), region = 64  ;;  %s2755_s10 = sshll.u32 (!%p2994_p5), %s2752_s21, 3 }
  0xdc   : > { %s462_s20 = scalar_lea.sflag (!%p2994_p5), [#allocation4], %s2752_s21  ;;  %s465_s27 = scalar_lea.vmem (!%p2994_p5), [#allocation3], %s2755_s10 }
  0xe2   : > { %2328 = dma.done.wait (%p2995_p3), %s462_s20, 128  }
  0xe3   : > { %2330 = vsyncadd (%p2995_p3), %s462_s20, 4294967168  ;;  %s470_s24 = sand.u32 1, %s2481_s23   ;;  %s474_s15 = scalar_lea.vmem [#allocation6], %s2755_s10 }
  0xe4   : > { %s471_s12 = scalar_lea.sflag [#allocation7], %s470_s24 }
  0xe5   : > { %2332 = dma.done.wait (%p2995_p3), %s471_s12, 256  }
  0xe6   : > { %2334 = vsyncadd (%p2995_p3), %s471_s12, 4294967040  ;;  %s483_s22 = scalar_lea.vmem [#allocation8], %s2755_s10  ;;  %p2996_p6 = scmp.eq.s32.totalorder %s2481_s23, 0 }
  0xe8   : > { %2336 = dma.done.wait (%p2996_p6), [#allocation10], 1024   ;;  %p2997_p0 = pmov %p2996_p6 }
  0xea   : > { %2338 = vsyncadd (%p2997_p0), [#allocation10], 4294966272  ;;  %p2998_p4 = pmov %p2997_p0 }
  0xeb   : > { %p2999_p10 = pmov %p2997_p0 }
  0xec   : > { %2340 = dma.done.wait (%p2998_p4), [#allocation13], 1024  }
  0xed   : > { %2342 = vsyncadd (%p2999_p10), [#allocation13], 4294966272  ;;  %v2380_v0 = vmov 0.0|0.0   ;;  %vm2381_vm0 = vmmov 0   ;;  %v2382_v1 = vmov 0.0   ;;  %v635_v2 = vld [vmem:[#allocation11] sm:$0xff] }
  0xee   : > { %1915 = vmatprep.subr.bf16.mxu1 %v2380_v0  ;;  %1909 = vmatprep.subr.bf16.mxu0 %v2380_v0  ;;  %v636_v3 = vld [vmem:[#allocation11 + $0x8] sm:$0xff]  ;;  %v549_v4 = vld [vmem:[#allocation9] sm:$0xff]  ;;  %v637_v7 = vld [vmem:[#allocation11 + $0x10] sm:$0xff]  ;;  %vm560_vm1 = vcmask 261120   ;;  %vm828_vm2 = vcmask 64512   ;;  %s2383_s3 = smov 112  }
  0xef   : > { %1844 = vmatprep.mubr.msk.f32.mxu1 %vm2381_vm0, %v2382_v1  ;;  %1833 = vmatprep.mubr.msk.f32.mxu0 %vm2381_vm0, %v2382_v1  ;;  %v1916_v5 = vpack.c.bf16 %v636_v3, %v635_v2  ;;  %v550_v6 = vld [vmem:[#allocation9 + $0x8] sm:$0xff]  ;;  %v638_v8 = vld [vmem:[#allocation11 + $0x18] sm:$0xff]  ;;  %v551_v10 = vld [vmem:[#allocation9 + $0x10] sm:$0xff]  ;;  %s2384_s26 = smov 120   ;;  %s2385_s9 = smov 104   ;;  %vm1466_vm3 = vcmask 130112  }
  0xf0   : > { %v1910_v9 = vpack.c.bf16 %v550_v6, %v549_v4  ;;  %v552_v11 = vld [vmem:[#allocation9 + $0x18] sm:$0xff]  ;;  %v1919_v12 = vpack.c.bf16 %v638_v8, %v637_v7  ;;  %v634_v14 = vld [vmem:[%s474_s15] sm:$0xff]  ;;  %v722_v18 = vld [vmem:[#allocation12 + $0x10] sm:$0xff]  ;;  %s3000_s28 = sld [smem:[#allocation32_spill]]  ;;  %s2386_s16 = smov 8   ;;  %vm1472_vm4 = vcmask 195712  }
  0xf1   : > { %1917 = vmatpush3.bf16.msra.mxu1 %v1916_v5  ;;  %v1913_v13 = vpack.c.bf16 %v552_v11, %v551_v10  ;;  %v548_v15 = vld [vmem:[%s465_s27] sm:$0xff]  ;;  %v720_v16 = vld [vmem:[#allocation12] sm:$0xff]  ;;  %v721_v17 = vld [vmem:[#allocation12 + $0x8] sm:$0xff]  ;;  %s2387_s29 = smov 16   ;;  %s3001_s5 = sld [smem:[#allocation22_spill]]  ;;  %vm1478_vm5 = vcmask 261312  }
  0xf2   : > { %1911 = vmatpush3.bf16.msra.mxu0 %v1910_v9  ;;  %1918 = vmatprep.subr.bf16.mxu1 %v2380_v0  ;;  %v1922_v19 = vpack.c.bf16 %v721_v17, %v720_v16  ;;  %v723_v20 = vld [vmem:[#allocation12 + $0x18] sm:$0xff]  ;;  %v1767_v23 = vld [vmem:[%s2930_s8] ss:$0 sm:$0xff]  ;;  %s2388_s13 = smov 24   ;;  %s3002_s1 = sld [smem:[#allocation26_spill]] }
  0xf3   : > { %1912 = vmatprep.subr.bf16.mxu0 %v2380_v0  ;;  %v1925_v21 = vpack.c.bf16 %v723_v20, %v722_v18  ;;  %v719_v22 = vld [vmem:[%s483_s22] sm:$0xff]  ;;  %v1765_v25 = vld [vmem:[%s2929_s7] ss:$0 sm:$0xff]  ;;  %s3003_s24 = sld [smem:[#allocation33_spill]]  ;;  %s547_s15 = scalar_lea.vmem [#allocation15], %s2755_s10 }
  0xf4   : > { %s1581_s22 = sshll.u32 %s547_s15, 4  ;;  %s3004_s14 = sld [smem:[#allocation34_spill]]  ;;  %s2874_s22 = int_to_ptr.vmem [resolvable:$true] %s1581_s22 }
  0xf5   : > { %1920 = vmatpush3.bf16.msra.mxu1 %v1919_v12  ;;  %s2389_s10 = smov [#allocation15]  }
  0xf6   : > { %1914 = vmatpush3.bf16.msra.mxu0 %v1913_v13  ;;  %1858 = vmatprep.subr.mxu1 %v2382_v1  ;;  %v1769_v31 = vld [vmem:[%s3000_s28] ss:$0 sm:$0xff] }
  0xf7   : > { %1921 = vmatprep.subr.bf16.mxu0 %v2380_v0  ;;  %s1786_s12 = sshll.u32 %s3001_s5, 7 }
  0xf8   : > { %1845 = vmatmul.mubr.msk.f32.vlgmr.msra.gmra.mrb[0].mxu1 %vm560_vm1, %v634_v14  ;;  %p3005_p2 = scmp.ne.s32.totalorder %s3002_s1, 0 }
  0xf9   : > { %1834 = vmatmul.mubr.msk.f32.vlgmr.msra.gmra.mrb[0].mxu0 %vm560_vm1, %v548_v15  ;;  %1860 = vmatprep.mubr.msk.f32.mxu1 %vm2381_vm0, %v2382_v1 }
  0xfa   : > { %1855 = vmatprep.mubr.msk.f32.mxu0 %vm2381_vm0, %v2382_v1  ;;  %1923 = vmatpush3.bf16.msra.mxu0 %v1922_v19  ;;  %s2872_s11 = scalar_lea.hbm %s3004_s14, %s1786_s12 }
  0xfb   : > { %1924 = vmatprep.subr.bf16.mxu0 %v2380_v0 }
  0xfe   : > { %1926 = vmatpush3.bf16.msra.mxu0 %v1925_v21 }
  0xff   : > { %1878 = vmatprep.subr.mxu0 %v2382_v1 }
 0x101   : > { %1856 = vmatmul.mubr.msk.f32.vlgmr.msra.gmra.mrb[2].mxu0 %vm560_vm1, %v719_v22  ;;  %v1482_v22 = vld [vmem:[#allocation14 + $0x8] sm:$0xff] }
 0x102   : > { %1880 = vmatprep.mubr.msk.f32.mxu0 %vm2381_vm0, %v2382_v1 }
 0x1cb   : > { %v715_v24 = vpop.f32.mrb[0].mxu1 }
 0x1cc   : > { %v716_v26 = vadd.f32 %v1767_v23, %v715_v24  ;;  %v1846_v27 = vpop.f32.mrb[1].mxu1  ;;  %v630_v28 = vpop.f32.mrb[0].mxu0  ;;  %v1483_v24 = vld [vmem:[#allocation14 + $0x10] sm:$0xff] }
 0x1cd   : > { %v1835_v29 = vpop.f32.mrb[1].mxu0  ;;  %v631_v30 = vadd.f32 %v1765_v25, %v630_v28  ;;  %v1484_v25 = vld [vmem:[#allocation14 + $0x18] sm:$0xff] }
 0x1ce   : > { %814 = vrot.lane.b32.xlu1 %v716_v26, %s2383_s3  ;;  %812 = vrot.lane.b32.xlu0 %v716_v26, %s2384_s26  ;;  %v1931_v28 = vpack.c.bf16 %v1484_v25, %v1483_v24 }
 0x1cf   : > { %1859 = vmatpush3.xpose.msk.msra.mxu1 %vm828_vm2, %v716_v26 }
 0x1d0   : > { %1863 = vmatprep.subr.mxu1 %v2382_v1 }
 0x1d2   : > { %1861 = vmatmul.mubr.msk.f32.vlgmr.msra.gmra.mrb[2].mxu1 %vm828_vm2, %v631_v30  ;;  %807 = vrot.lane.b32.xlu1 %v631_v30, %s2383_s3 }
 0x1d3   : > { %805 = vrot.lane.b32.xlu0 %v631_v30, %s2384_s26  ;;  %1865 = vmatprep.mubr.msk.f32.mxu1 %vm2381_vm0, %v2382_v1 }
 0x1d4   : > { %v800_v32 = vpop.f32.mrb[2].mxu0 }
 0x1d5   : > { %v801_v33 = vadd.f32 %v1769_v31, %v800_v32  ;;  %v1857_v34 = vpop.f32.mrb[3].mxu0 }
 0x1d6   : > { %809 = vrot.lane.b32.xlu1 %v631_v30, %s2385_s9 }
 0x1d7   : > { %816 = vrot.lane.b32.xlu0 %v716_v26, %s2385_s9  ;;  %1879 = vmatpush3.msra.mxu0 %v801_v33 }
 0x1d8   : > { %1888 = vmatprep.subr.mxu0 %v2382_v1 }
 0x1da   : > { %819 = vrot.lane.b32.xlu1 %v801_v33, %s2384_s26  ;;  %s2275_s26 = scalar_lea.vmem %s2874_s22, 128 }
 0x1db   : > { %p2276_p13 = scmp.ne.s32.totalorder %s2874_s22, %s2275_s26 }
 0x1dd   : > { %p2277_p1 = pnand %p2276_p13, %p3005_p2 }
 0x1df   : > { %p2278_p12 = pneg %p2277_p1 }
 0x240   : > { %v813_v35 = vpop.permute.xlu0 %812  ;;  %v815_v36 = vpop.permute.xlu1 %814 }
 0x241   : > { %1864 = vmatpush3.xpose.msk.msra.mxu1 %vm828_vm2, %v813_v35 }
 0x242   : > { %1868 = vmatprep.subr.mxu1 %v2382_v1 }
 0x244   : > { %v808_v38 = vpop.permute.xlu1 %807 }
 0x245   : > { %v806_v37 = vpop.permute.xlu0 %805 }
 0x246   : > { %1866 = vmatmul.mubr.msk.f32.vlgmr.msra.gmra.mrb[4].mxu1 %vm828_vm2, %v806_v37 }
 0x247   : > { %1869 = vmatpush3.xpose.msk.msra.mxu1 %vm828_vm2, %v815_v36  ;;  %1870 = vmatprep.mubr.msk.f32.mxu1 %vm2381_vm0, %v2382_v1 }
 0x248   : > { %1873 = vmatprep.subr.mxu1 %v2382_v1  ;;  %v810_v40 = vpop.permute.xlu1 %809 }
 0x249   : > { %v817_v39 = vpop.permute.xlu0 %816 }
 0x24a   : > { %1871 = vmatmul.mubr.msk.f32.vlgmr.msra.gmra.mrb[6].mxu1 %vm828_vm2, %v808_v38 }
 0x24b   : > { %1874 = vmatpush3.xpose.msk.msra.mxu1 %vm828_vm2, %v817_v39  ;;  %1875 = vmatprep.mubr.msk.f32.mxu1 %vm2381_vm0, %v2382_v1 }
 0x24c   : > { %1883 = vmatprep.subr.mxu1 %v2382_v1  ;;  %v820_v44 = vpop.permute.xlu1 %819 }
 0x24e   : > { %1876 = vmatmul.mubr.msk.f32.vlgmr.msra.gmra.mrb[8].mxu1 %vm828_vm2, %v810_v40 }
 0x24f   : > { %1885 = vmatprep.mubr.msk.f32.mxu1 %vm2381_vm0, %v2382_v1  ;;  %1884 = vmatpush3.msra.mxu1 %v820_v44 }
 0x250   : > { %1893 = vmatprep.subr.mxu1 %v2382_v1 }
 0x2a5   : > { %v899_v41 = vpop.f32.mrb[2].mxu1 }
 0x2a6   : > { %v1862_v42 = vpop.f32.mrb[3].mxu1  ;;  %v1125_v43 = vsel %vm828_vm2, %v899_v41, -inf }
 0x2a7   : > { %1126 = vmax.xlane.f32.xlu0 %v1125_v43  ;;  %v1783_v42 = vld [vmem:[%s3003_s24] ss:$0 sm:$0xff] }
 0x319   : > { %v973_v45 = vpop.f32.mrb[4].mxu1 }
 0x31a   : > { %v1867_v46 = vpop.f32.mrb[5].mxu1  ;;  %v1128_v47 = vsel %vm828_vm2, %v973_v45, -inf }
 0x31b   : > { %1129 = vmax.xlane.f32.xlu1 %v1128_v47 }
 0x31d   : > { %v1047_v48 = vpop.f32.mrb[6].mxu1 }
 0x31e   : > { %v1872_v49 = vpop.f32.mrb[7].mxu1  ;;  %v1131_v50 = vsel %vm828_vm2, %v1047_v48, -inf }
 0x31f   : > { %1132 = vmax.xlane.f32.xlu0 %v1131_v50 }
 0x321   : > { %v1121_v51 = vpop.f32.mrb[8].mxu1 }
 0x322   : > { %v1877_v52 = vpop.f32.mrb[9].mxu1  ;;  %v1134_v53 = vsel %vm828_vm2, %v1121_v51, -inf }
 0x323   : > { %1135 = vmax.xlane.f32.xlu0 %v1134_v53 }
 0x32c   : > { %825 = vrot.lane.b32.xlu1 %v801_v33, %s2385_s9  ;;  %s2279_s9 = sshll.u32 %s2389_s10, 4  ;;  %s2280_s9 = int_to_ptr.vmem [resolvable:$false] %s2279_s9 }
 0x32d   : > { %s2281_s17 = scalar_lea.vmem %s2280_s9, 256  ;;  %p2282_p8 = scmp.lt.s32.totalorder %s2874_s22, %s2280_s9 }
 0x32e   : > { %p2283_p9 = scmp.lt.s32.totalorder %s2281_s17, %s2275_s26 }
 0x330   : > { %p2284_p7 = por %p2283_p9, %p2282_p8 }
 0x332   : > { %p2285_p11 = pnand %p2284_p7, %p2278_p12 }
 0x334   : > { %v1127_v54 = vpop.xlane.xlu0 %1126 }
 0x335   : > { %v1137_v55 = vsub.f32 %v899_v41, %v1127_v54 }
 0x337   : > { %v1141_v56 = vmul.f32 1.442695, %v1137_v55 }
 0x339   : > { %2057 = vpow2.f32 %v1141_v56  ;;  %822 = vrot.lane.b32.xlu0 %v801_v33, %s2383_s3  ;;  %s1567_s3 = scalar_lea.sflag [#allocation5], %s2752_s21 }
 0x343   : > { %v2058_v57 = vpop.eup %2057 }
 0x344   : > { %1881 = vmatmul.mubr.msk.f32.vlgmr.msra.gmra.mrb[4].mxu0 %vm828_vm2, %v2058_v57  ;;  %v1149_v11 = vsel %vm828_vm2, %v2058_v57, 0.0 }
 0x345   : > { %1890 = vmatprep.mubr.msk.f32.mxu0 %vm2381_vm0, %v2382_v1 }
 0x3a8   : > { %v1130_v58 = vpop.xlane.xlu1 %1129 }
 0x3a9   : > { %v1138_v59 = vsub.f32 %v973_v45, %v1130_v58 }
 0x3ab   : > { %v1143_v60 = vmul.f32 1.442695, %v1138_v59 }
 0x3ac   : > { %v1133_v61 = vpop.xlane.xlu0 %1132  ;;  %v826_v7 = vpop.permute.xlu1 %825 }
 0x3ad   : > { %2059 = vpow2.f32 %v1143_v60  ;;  %v1139_v62 = vsub.f32 %v1047_v48, %v1133_v61 }
 0x3af   : > { %v1145_v63 = vmul.f32 1.442695, %v1139_v62 }
 0x3b0   : > { %v1136_v2 = vpop.xlane.xlu0 %1135 }
 0x3b1   : > { %2061 = vpow2.f32 %v1145_v63  ;;  %v1140_v3 = vsub.f32 %v1121_v51, %v1136_v2 }
 0x3b3   : > { %v1147_v4 = vmul.f32 1.442695, %v1140_v3 }
 0x3b4   : > { %v823_v5 = vpop.permute.xlu0 %822 }
 0x3b5   : > { %2063 = vpow2.f32 %v1147_v4  ;;  %1889 = vmatpush3.msra.mxu0 %v823_v5 }
 0x3b6   : > { %1927 = vmatprep.subr.bf16.mxu0 %v2380_v0 }
 0x3b7   : > { %v2060_v6 = vpop.eup %2059 }
 0x3b8   : > { %1886 = vmatmul.mubr.msk.f32.vlgmr.msra.gmra.mrb[10].mxu1 %vm828_vm2, %v2060_v6  ;;  %v1152_v8 = vsel %vm828_vm2, %v2060_v6, 0.0 }
 0x3b9   : > { %1894 = vmatpush3.msra.mxu1 %v826_v7  ;;  %1153 = vadd.xlane.f32.xlu1 %v1152_v8 }
 0x3ba   : > { %1895 = vmatprep.mubr.msk.f32.mxu1 %vm2381_vm0, %v2382_v1 }
 0x3bb   : > { %v2062_v9 = vpop.eup %2061 }
 0x3bc   : > { %1891 = vmatmul.mubr.msk.f32.vlgmr.msra.gmra.mrb[6].mxu0 %vm828_vm2, %v2062_v9  ;;  %v1155_v10 = vsel %vm828_vm2, %v2062_v9, 0.0 }
 0x3bd   : > { %1156 = vadd.xlane.f32.xlu0 %v1155_v10  ;;  %1150 = vadd.xlane.f32.xlu1 %v1149_v11 }
 0x3be   : > { %1906 = vmatprep.mubr.msk.f32.mxu0 %vm2381_vm0, %v2382_v1  ;;  %v1481_v1 = vld [vmem:[#allocation14] sm:$0xff] }
 0x3bf   : > { %v2064_v12 = vpop.eup %2063  ;;  %v1928_v23 = vpack.c.bf16 %v1482_v22, %v1481_v1 }
 0x3c0   : > { %1896 = vmatmul.mubr.msk.f32.vlgmr.msra.gmra.mrb[12].mxu1 %vm828_vm2, %v2064_v12  ;;  %v1158_v13 = vsel %vm828_vm2, %v2064_v12, 0.0 }
 0x3c1   : > { %1159 = vadd.xlane.f32.xlu0 %v1158_v13  ;;  %1929 = vmatpush3.bf16.msra.mxu0 %v1928_v23 }
 0x3c2   : > { %1930 = vmatprep.subr.bf16.mxu0 %v2380_v0 }
 0x3c5   : > { %1932 = vmatpush3.bf16.msra.mxu0 %v1931_v28 }
 0x417   : > { %v1230_v14 = vpop.f32.mrb[4].mxu0 }
 0x418   : > { %v1882_v15 = vpop.f32.mrb[5].mxu0 }
 0x446   : > { %v1154_v16 = vpop.xlane.xlu1 %1153 }
 0x44a   : > { %v1151_v17 = vpop.xlane.xlu1 %1150  ;;  %v1157_v20 = vpop.xlane.xlu0 %1156 }
 0x44b   : > { %2065 = vrcp.f32 %v1151_v17 }
 0x44c   : > { %2067 = vrcp.f32 %v1154_v16 }
 0x44d   : > { %2069 = vrcp.f32 %v1157_v20 }
 0x44e   : > { %v1160_v21 = vpop.xlane.xlu0 %1159 }
 0x44f   : > { %2071 = vrcp.f32 %v1160_v21 }
 0x455   : > { %v2066_v18 = vpop.eup %2065 }
 0x456   : > { %v1457_v19 = vmul.f32 %v2066_v18, %v1230_v14  ;;  %v2068_v26 = vpop.eup %2067 }
 0x457   : > { %v2070_v31 = vpop.eup %2069 }
 0x458   : > { %1461 = vst.msk [vmem:[#allocation2] sm:$0xff] %vm828_vm2, %v1457_v19 }
 0x459   : > { %v2072_v35 = vpop.eup %2071 }
 0x48b   : > { %v1303_v27 = vpop.f32.mrb[10].mxu1 }
 0x48c   : > { %v1458_v29 = vmul.f32 %v2068_v26, %v1303_v27  ;;  %v1887_v30 = vpop.f32.mrb[11].mxu1 }
 0x48e   : > { %1463 = vrot.lane.b32.xlu0 %v1458_v29, %s2386_s16 }
 0x48f   : > { %v1376_v32 = vpop.f32.mrb[6].mxu0 }
 0x490   : > { %v1459_v33 = vmul.f32 %v2070_v31, %v1376_v32  ;;  %v1892_v34 = vpop.f32.mrb[7].mxu0 }
 0x492   : > { %1469 = vrot.lane.b32.xlu1 %v1459_v33, %s2387_s29 }
 0x493   : > { %v1449_v36 = vpop.f32.mrb[12].mxu1 }
 0x494   : > { %v1460_v37 = vmul.f32 %v2072_v35, %v1449_v36  ;;  %v1897_v38 = vpop.f32.mrb[13].mxu1 }
 0x496   : > { %1475 = vrot.lane.b32.xlu1 %v1460_v37, %s2388_s13 }
 0x500   : > { %v1464_v39 = vpop.permute.xlu0 %1463 }
 0x501   : > { %1467 = vst.msk [vmem:[#allocation2] sm:$0xff] %vm1466_vm3, %v1464_v39 }
 0x504   : > { %v1470_v0 = vpop.permute.xlu1 %1469 }
 0x505   : > { %1473 = vst.msk [vmem:[#allocation2] sm:$0xff] %vm1472_vm4, %v1470_v0 }
 0x508   : > { %v1476_v40 = vpop.permute.xlu1 %1475 }
 0x509   : > { %1479 = vst.msk [vmem:[#allocation2] sm:$0xff] %vm1478_vm5, %v1476_v40 }
 0x510   : > { %v1480_v41 = vld [vmem:[#allocation2] sm:$0xff] }
 0x511   : > { %1907 = vmatmul.mubr.msk.f32.vlgmr.msra.gmra.mrb[8].mxu0 %vm560_vm1, %v1480_v41 }
 0x5e4   : > { %v1561_v43 = vpop.f32.mrb[8].mxu0 }
 0x5e5   : > { %v1562_v44 = vadd.f32 %v1783_v42, %v1561_v43  ;;  %v1908_v45 = vpop.f32.mrb[9].mxu0 }
 0x5e7   : > { %1565 = vst.msk [vmem:[%s547_s15] sm:$0xff] %vm560_vm1, %v1562_v44 }
 0x5e8   : > { %2288 = shalt.err (!%p2285_p11)
}
 0x5e9   : > { %s2289_s21 = scalar_lea.hbm %s2872_s11, 128  ;;  %s2293_s16 = scalar_lea.hbm %s3004_s14, 256 }
 0x5ea   : > { %p2290_p5 = scmp.ne.s32.totalorder %s2872_s11, %s2289_s21  ;;  %p2294_p0 = scmp.lt.u32.totalorder %s2872_s11, %s3004_s14 }
 0x5eb   : > { %p2295_p4 = scmp.lt.u32.totalorder %s2293_s16, %s2289_s21  ;;  %p2297_p13 = scmp.lt.u32.totalorder %s2289_s21, %s2872_s11 }
 0x5ec   : > { %p2291_p3 = pnand %p2290_p5, %p3005_p2 }
 0x5ed   : > { %p2296_p10 = por %p2295_p4, %p2294_p0 }
 0x5ee   : > { %p2292_p6 = pneg %p2291_p3 }
 0x5ef   : > { %p2298_p1 = por %p2297_p13, %p2296_p10 }
 0x5f1   : > { %p2299_p12 = pnand %p2298_p1, %p2292_p6 }
 0x5f3   : > { %2302 = shalt.err (!%p2299_p12)
}
 0x5f4   : > { %1955 = dma.vmem_to_hbm [thread:$0]  (%p3005_p2), %s2874_s22, 128, %s2872_s11, %s1567_s3  }
 0x5f5 PF: > { %s3006_s13 = sld [smem:[#allocation21_spill]]  ;;  %s3007_s20 = sld [smem:[#allocation28_spill]] }
 0x5f6   : > { %s3008_s27 = sld [smem:[#allocation24_spill]] }
 0x5fb   : > { %s1593_s24 = sand.u32 1, %s3006_s13   ;;  %p3009_p8 = scmp.ne.s32.totalorder %s3007_s20, 0 }
 0x5fc   : > { %p3010_p9 = scmp.ge.s32.totalorder %s3008_s27, 2  ;;  %s1594_s12 = scalar_lea.sflag [#allocation5], %s1593_s24 }
 0x5fe   : > { %p1981_p7 = pnand %p3010_p9, %p3009_p8 }
 0x600   : > { %2344 = dma.done.wait (!%p1981_p7), %s1594_s12, 128  }
 0x601   : > { %2346 = vsyncadd (!%p1981_p7), %s1594_s12, 4294967168  ;;  %s32_s22 = sadd.s32 1, %s3008_s27   ;;  %s3011_s1 = sld [smem:[#allocation27_spill]] }
 0x602   : > { %p29_p11 = scmp.ge.s32.totalorder %s32_s22, 4   ;;  %s3012_s20 = sld [smem:[#allocation23_spill]] }
 0x603   : > { %s3013_s21 = sld [smem:[#allocation25_spill]]  ;;  %s3014_s17 = smov %s2353_s18 }
 0x604   : > { %s3015_s18 = smov %s2357_s19  ;;  %31 = sbr.rel (!%p29_p11) target bundleno = 17 (0x11), region = 149 }
 0x607   : > { %s3016_s19 = smov %s3011_s1 }
 0x60b   :  { %1599 = vsyncpa [#allocation4], 1 }
 0x60c   :  { %1601 = vsyncpa [#allocation4 + $0x1], 1 }
 0x60d   :  { %1602 = vsyncpa [#allocation7], 1 }
 0x60e   :  { %1604 = vsyncpa [#allocation7 + $0x1], 1 }
 0x60f   :  { %1605 = vsyncpa [#allocation10], 1 }
 0x610   :  { %1606 = vsyncpa [#allocation13], 1 }
 0x611   :  { %1607 = vsyncpa [#allocation5], 1 }
 0x612   :  { %1609 = vsyncpa [#allocation5 + $0x1], 1 }

</bundles_post_ra>
